<compile_context>
chip_gen: v6e
topology: v6e:2x2x1
jax: 0.10.0
libtpu: 0.0.40
codegen_flags: <defaults>
</compile_context>

<pallas_src>
import functools
import math

import jax
import jax.numpy as jnp
from jax.experimental import pallas as pl
from jax.experimental.pallas import tpu as pltpu

_LN_EPS = 1e-5


# ----------------------------------------------------------------------------
# Hardware budget / tiling helpers
# ----------------------------------------------------------------------------

@functools.lru_cache(maxsize=None)
def _budget():
    """(vmem_limit_bytes, tm_target, tn_target, tk_target) per generation."""
    vmem_phys = 64 * 1024 * 1024  # conservative default (v7x per-TC VMEM)
    try:
        info = pltpu.get_tpu_info()
        cap = getattr(info, "vmem_capacity_bytes", None)
        if cap:
            vmem_phys = int(cap)
    except Exception:
        pass
    if vmem_phys >= 128 * 1024 * 1024:
        # v5e / v6e: 128 MiB VMEM -> bigger tiles cut redundant HBM streaming.
        return 80 * 1024 * 1024, 512, 512, 1024
    # v7x (64 MiB physical VMEM): stay conservative.
    return 32 * 1024 * 1024, 256, 256, 512


def _pick_tile(dim, target, align):
    """Largest divisor of `dim` that is <= `target` and a multiple of `align`
    (respects the TPU layout rule: block dims are multiples of the native tile
    or equal to the full array dim).  Falls back to the full dim."""
    if dim <= target:
        return dim
    best = 0
    t = align
    while t <= target:
        if dim % t == 0:
            best = t
        t += align
    return best if best else dim


def _choose_bb(B, S, num_heads):
    """Batch elements per MHA grid step.  Prefer blocks whose row count is
    bf16-sublane friendly (multiple of 16 or the full row count), then >= 2
    grid steps (so v7x's second TensorCore is not idle), then larger blocks
    (fewer per-grid-step overheads)."""
    total = B * S
    cap = max(1, min(B,
                     max(1, 16 // max(num_heads, 1)),
                     max(1, 1024 // max(S, 1))))
    best, best_score = 1, (-1, -1, -1)
    for bb in range(1, B + 1):
        if B % bb or bb > cap:
            continue
        rows = bb * S
        layout_ok = int(rows % 16 == 0 or rows == total)
        multi_step = int(B // bb >= 2)
        score = (layout_ok, multi_step, bb)
        if score > best_score:
            best, best_score = bb, score
    return best


# ----------------------------------------------------------------------------
# Pallas kernels
# ----------------------------------------------------------------------------

def _matmul_bias_kernel(x_ref, w_ref, b_ref, o_ref, acc_ref, *, activation):
    """o = act(x @ w + b); bf16 MXU inputs, f32 accumulation over the K axis."""
    k = pl.program_id(2)

    @pl.when(k == 0)
    def _():
        acc_ref[...] = jnp.zeros_like(acc_ref)

    acc_ref[...] += jnp.dot(
        x_ref[...], w_ref[...], preferred_element_type=jnp.float32
    )

    @pl.when(k == pl.num_programs(2) - 1)
    def _():
        y = acc_ref[...] + b_ref[...]
        if activation == "relu":
            y = jnp.maximum(y, 0.0)
        o_ref[...] = y.astype(o_ref.dtype)


def _matmul_bias_ln_kernel(*refs, eps, has_residual):
    """o = LayerNorm((x @ w + b) [+ residual]); full feature dim in one block
    so the LN reduction is local; LN stats in f32."""
    if has_residual:
        x_ref, w_ref, b_ref, r_ref, g_ref, bt_ref, o_ref, acc_ref = refs
    else:
        x_ref, w_ref, b_ref, g_ref, bt_ref, o_ref, acc_ref = refs
        r_ref = None

    k = pl.program_id(1)

    @pl.when(k == 0)
    def _():
        acc_ref[...] = jnp.zeros_like(acc_ref)

    acc_ref[...] += jnp.dot(
        x_ref[...], w_ref[...], preferred_element_type=jnp.float32
    )

    @pl.when(k == pl.num_programs(1) - 1)
    def _():
        y = acc_ref[...] + b_ref[...]
        if has_residual:
            y = y + r_ref[...].astype(jnp.float32)
        mean = jnp.mean(y, axis=-1, keepdims=True)
        var = jnp.mean((y - mean) ** 2, axis=-1, keepdims=True)
        inv = jax.lax.rsqrt(var + eps)
        o_ref[...] = ((y - mean) * inv * g_ref[...] + bt_ref[...]).astype(o_ref.dtype)


def _mha_kernel(qkv_ref, o_ref, *, batch_block, seq_len, num_heads, head_dim,
                scale):
    """Self-attention over a (batch_block*seq_len, 3*d_model) bf16 QKV block.

    Per head, Q/K/V are sliced straight off the Ref (no whole-slab vreg load),
    scores/softmax are f32, and the per-batch-element head outputs are
    concatenated so the store is one lane-dense (seq_len, d_model) write.
    MXU note: at head_dim < 128 the array is under-filled; attention is
    latency/VPU-bound here and the FF matmuls dominate, so no extra packing.
    """
    # TODO(synk): for large S (>~512) switch to flash-style KV tiling with an
    # online softmax instead of materialising the (S, S) score matrix.
    d_model = num_heads * head_dim
    for b in range(batch_block):
        r0 = b * seq_len
        head_outs = []
        for h in range(num_heads):
            c = h * head_dim
            q = qkv_ref[r0:r0 + seq_len, c:c + head_dim]
            k = qkv_ref[r0:r0 + seq_len, d_model + c:d_model + c + head_dim]
            v = qkv_ref[r0:r0 + seq_len, 2 * d_model + c:2 * d_model + c + head_dim]
            # q @ k^T without an explicit transpose (contract last axes).
            s = jax.lax.dot_general(
                q, k, (((1,), (1,)), ((), ())),
                preferred_element_type=jnp.float32) * scale
            m = jnp.max(s, axis=-1, keepdims=True)
            p = jnp.exp(s - m)
            denom = jnp.sum(p, axis=-1, keepdims=True)
            p = p * pl.reciprocal(denom, approx=True)
            o = jnp.dot(p.astype(v.dtype), v, preferred_element_type=jnp.float32)
            head_outs.append(o)
        # One lane-dense, full-width (d_model) store per batch element.
        o_ref[r0:r0 + seq_len, :] = jnp.concatenate(
            head_outs, axis=-1).astype(o_ref.dtype)


# ----------------------------------------------------------------------------
# Pallas wrappers
# ----------------------------------------------------------------------------

def matmul_bias(x, w, b, activation=None, out_dtype=jnp.bfloat16):
    """x: (M, K), w: (K, N), b: (N,) -> act(x @ w + b), tiled M/N/K, bf16 MXU."""
    M, K = x.shape
    N = w.shape[1]
    limit, tgt_m, tgt_n, tgt_k = _budget()
    tm = _pick_tile(M, tgt_m, 16)     # bf16 sublane alignment
    tn = _pick_tile(N, tgt_n, 128)
    tk = _pick_tile(K, tgt_k, 128)
    grid = (M // tm, N // tn, K // tk)
    kern = functools.partial(_matmul_bias_kernel, activation=activation)
    return pl.pallas_call(
        kern,
        out_shape=jax.ShapeDtypeStruct((M, N), out_dtype),
        grid=grid,
        in_specs=[
            pl.BlockSpec((tm, tk), lambda i, j, k: (i, k)),
            pl.BlockSpec((tk, tn), lambda i, j, k: (k, j)),
            pl.BlockSpec((1, tn), lambda i, j, k: (0, j)),
        ],
        out_specs=pl.BlockSpec((tm, tn), lambda i, j, k: (i, j)),
        scratch_shapes=[pltpu.VMEM((tm, tn), jnp.float32)],
        compiler_params=pltpu.CompilerParams(
            dimension_semantics=("parallel", "parallel", "arbitrary"),
            vmem_limit_bytes=limit,
        ),
    )(x.astype(jnp.bfloat16), w.astype(jnp.bfloat16),
      b.astype(jnp.float32).reshape(1, N))


def matmul_bias_ln(x, w, b, gamma, beta, *, residual=None, eps=_LN_EPS,
                   out_dtype=jnp.bfloat16):
    """LayerNorm((x @ w + b) [+ residual]); fused matmul + (residual) + LN."""
    M, K = x.shape
    N = w.shape[1]
    limit, _, _, tgt_k = _budget()
    # Keep the (tk, N) bf16 weight block <= ~4 MiB and cap tm at 128 for wide N
    # so the (tm, N) f32 LN epilogue stays inside the vreg file (no spills).
    tk_cap = max(128, (4 * 1024 * 1024) // (2 * N))
    tm_target = 128 if N >= 512 else 256
    tm = _pick_tile(M, tm_target, 16)
    tk = _pick_tile(K, min(tgt_k, tk_cap), 128)
    grid = (M // tm, K // tk)

    has_residual = residual is not None
    kern = functools.partial(_matmul_bias_ln_kernel, eps=eps,
                             has_residual=has_residual)
    in_specs = [
        pl.BlockSpec((tm, tk), lambda i, k: (i, k)),   # x
        pl.BlockSpec((tk, N), lambda i, k: (k, 0)),    # w (full feature dim)
        pl.BlockSpec((1, N), lambda i, k: (0, 0)),     # bias (f32)
    ]
    args = [x.astype(jnp.bfloat16), w.astype(jnp.bfloat16),
            b.astype(jnp.float32).reshape(1, N)]
    if has_residual:
        in_specs.append(pl.BlockSpec((tm, N), lambda i, k: (i, 0)))
        args.append(residual)
    in_specs += [
        pl.BlockSpec((1, N), lambda i, k: (0, 0)),     # gamma (f32)
        pl.BlockSpec((1, N), lambda i, k: (0, 0)),     # beta  (f32)
    ]
    args += [gamma.astype(jnp.float32).reshape(1, N),
             beta.astype(jnp.float32).reshape(1, N)]

    return pl.pallas_call(
        kern,
        out_shape=jax.ShapeDtypeStruct((M, N), out_dtype),
        grid=grid,
        in_specs=in_specs,
        out_specs=pl.BlockSpec((tm, N), lambda i, k: (i, 0)),
        scratch_shapes=[pltpu.VMEM((tm, N), jnp.float32)],
        compiler_params=pltpu.CompilerParams(
            dimension_semantics=("parallel", "arbitrary"),
            vmem_limit_bytes=limit,
        ),
    )(*args)


def mha(qkv2d, B, S, num_heads):
    """Self-attention over a fused (B*S, 3*d_model) bf16 QKV activation.

    Output: (B*S, d_model) bf16 with heads concatenated (out_proj-ready)."""
    N, three_d = qkv2d.shape
    d_model = three_d // 3
    head_dim = d_model // num_heads
    scale = 1.0 / math.sqrt(head_dim)
    limit = _budget()[0]

    bb = _choose_bb(B, S, num_heads)
    rows = bb * S
    grid = (B // bb,)

    kern = functools.partial(
        _mha_kernel, batch_block=bb, seq_len=S, num_heads=num_heads,
        head_dim=head_dim, scale=scale)
    return pl.pallas_call(
        kern,
        out_shape=jax.ShapeDtypeStruct((N, d_model), jnp.bfloat16),
        grid=grid,
        in_specs=[pl.BlockSpec((rows, three_d), lambda i: (i, 0))],
        out_specs=pl.BlockSpec((rows, d_model), lambda i: (i, 0)),
        compiler_params=pltpu.CompilerParams(
            dimension_semantics=("parallel",),
            vmem_limit_bytes=limit,
        ),
    )(qkv2d)


# ----------------------------------------------------------------------------
# Model glue
# ----------------------------------------------------------------------------

def encoder_layer(x2d, B, S, num_heads, p):
    """Post-norm TransformerEncoderLayer (activation=relu, dropout=identity)."""
    qkv = matmul_bias(x2d, p["in_proj_w"], p["in_proj_b"])            # (N, 3d) bf16
    attn = mha(qkv, B, S, num_heads)                                  # (N, d)  bf16
    # out_proj + residual + LayerNorm fused in one kernel.
    x2d = matmul_bias_ln(attn, p["out_proj_w"], p["out_proj_b"],
                         p["ln1_g"], p["ln1_b"], residual=x2d)
    ff = matmul_bias(x2d, p["ff1_w"], p["ff1_b"], activation="relu")  # (N, dff) bf16
    # ff2 + residual + LayerNorm fused in one kernel.
    x2d = matmul_bias_ln(ff, p["ff2_w"], p["ff2_b"],
                         p["ln2_g"], p["ln2_b"], residual=x2d)
    return x2d


def graph_transformer_v2_forward(params, x, weights=None, *, num_heads,
                                 use_weights=True):
    """x: (B, S, input_dim); weights: optional list of scalars."""
    B, S, input_dim = x.shape
    x2d = x.astype(jnp.float32).reshape(B * S, input_dim)

    if use_weights and weights is not None:
        # Algebraic collapse of the weight_linears loop (exact by linearity):
        #   sum_i s_i * (x @ W_i + b_i) = x @ (sum_i s_i W_i) + sum_i s_i b_i
        w_stack = jnp.stack([wl["w"] for wl in params["weight_linears"]])
        b_stack = jnp.stack([wl["b"] for wl in params["weight_linears"]])
        s_vec = jnp.stack([jnp.asarray(w, jnp.float32) for w in weights])
        w_eff = jnp.einsum("n,nio->io", s_vec, w_stack)
        b_eff = s_vec @ b_stack
    else:
        w_eff, b_eff = params["input_w"], params["input_b"]

    # Input projection + LayerNorm fused (no-residual LN variant).
    h = matmul_bias_ln(x2d, w_eff, b_eff, params["ln_g"], params["ln_b"],
                       residual=None)

    for lp in params["layers"]:
        h = encoder_layer(h, B, S, num_heads, lp)

    out = matmul_bias(h, params["output_w"], params["output_b"],
                      out_dtype=jnp.float32)
    # TODO(synk): nn.Dropout after output_linear is identity in eval mode; not applied.
    return out.reshape(B, S, input_dim)


# ----------------------------------------------------------------------------
# Deterministic parameter init (shapes match the PyTorch __init__)
# ----------------------------------------------------------------------------

def _dense_init(key, fan_in, fan_out):
    kw, kb = jax.random.split(key)
    bound = 1.0 / math.sqrt(fan_in)
    w = jax.random.uniform(kw, (fan_in, fan_out), jnp.float32, -bound, bound)
    b = jax.random.uniform(kb, (fan_out,), jnp.float32, -bound, bound)
    return w, b


def init_params(key, *, num_layers, d_model, d_ff, input_dim, num_weights):
    keys = iter(jax.random.split(key, 8 + 8 * num_layers + 2 * num_weights))
    params = {}
    params["input_w"], params["input_b"] = _dense_init(next(keys), input_dim, d_model)
    params["output_w"], params["output_b"] = _dense_init(next(keys), d_model, input_dim)
    params["ln_g"] = jnp.ones((d_model,), jnp.float32)
    params["ln_b"] = jnp.zeros((d_model,), jnp.float32)

    params["weight_linears"] = []
    for _ in range(num_weights):
        w, b = _dense_init(next(keys), input_dim, d_model)
        params["weight_linears"].append({"w": w, "b": b})

    params["layers"] = []
    for _ in range(num_layers):
        lp = {}
        lp["in_proj_w"], lp["in_proj_b"] = _dense_init(next(keys), d_model, 3 * d_model)
        lp["out_proj_w"], lp["out_proj_b"] = _dense_init(next(keys), d_model, d_model)
        lp["ff1_w"], lp["ff1_b"] = _dense_init(next(keys), d_model, d_ff)
        lp["ff2_w"], lp["ff2_b"] = _dense_init(next(keys), d_ff, d_model)
        lp["ln1_g"] = jnp.ones((d_model,), jnp.float32)
        lp["ln1_b"] = jnp.zeros((d_model,), jnp.float32)
        lp["ln2_g"] = jnp.ones((d_model,), jnp.float32)
        lp["ln2_b"] = jnp.zeros((d_model,), jnp.float32)
        params["layers"].append(lp)
    return params


# ----------------------------------------------------------------------------
# Example run
# ----------------------------------------------------------------------------

if __name__ == "__main__":
    # Small config: num_layers=2, d_model=32, num_heads=4, d_ff=64,
    # input_dim=16, num_weights=3, batch=2, seq=8.
    NUM_LAYERS, D_MODEL, NUM_HEADS, D_FF = 2, 32, 4, 64
    INPUT_DIM, NUM_WEIGHTS = 16, 3
    B, S = 2, 8

    root = jax.random.PRNGKey(0)
    k_params, k_x = jax.random.split(root)
    params = init_params(
        k_params,
        num_layers=NUM_LAYERS,
        d_model=D_MODEL,
        d_ff=D_FF,
        input_dim=INPUT_DIM,
        num_weights=NUM_WEIGHTS,
    )
    x = jax.random.normal(k_x, (B, S, INPUT_DIM), jnp.float32)
    weights = [0.5, 0.3, 0.2]  # exercises the use_weights branch

    fwd = jax.jit(
        functools.partial(
            graph_transformer_v2_forward, num_heads=NUM_HEADS, use_weights=True
        )
    )
    out = fwd(params, x, weights)
    jax.block_until_ready(out)
    assert out.shape == (B, S, INPUT_DIM)
    assert out.dtype == jnp.float32
    assert jnp.all(jnp.isfinite(out))

    # Also exercise the weights=None path (input_linear).
    out2 = graph_transformer_v2_forward(
        params, x, None, num_heads=NUM_HEADS, use_weights=True
    )
    jax.block_until_ready(out2)
    assert out2.shape == (B, S, INPUT_DIM)
    assert jnp.all(jnp.isfinite(out2))

    print("KERNEL_OK")
</pallas_src>

<mosaic_0001>
module attributes {stable_mosaic.version = 11 : i64} {
  func.func @_matmul_bias_kernel(%arg0: i32, %arg1: i32, %arg2: i32, %arg3: memref<16x32xbf16, #tpu.memory_space<vmem>>, %arg4: memref<32x96xbf16, #tpu.memory_space<vmem>>, %arg5: memref<1x96xf32, #tpu.memory_space<vmem>>, %arg6: memref<16x96xbf16, #tpu.memory_space<vmem>>, %arg7: memref<16x96xf32, #tpu.memory_space<vmem>>) attributes {dimension_semantics = [#tpu.dimension_semantics<parallel>, #tpu.dimension_semantics<parallel>, #tpu.dimension_semantics<arbitrary>], iteration_bounds = array<i64: 1, 1, 1>, scalar_prefetch = 0 : i64, scratch_operands = 1 : i64, tpu.core_type = #tpu.core_type<tc>, window_params = [{transform_indices = @transform_0, window_bounds = array<i64: 16, 32>}, {transform_indices = @transform_1, window_bounds = array<i64: 32, 96>}, {transform_indices = @transform_2, window_bounds = array<i64: 1, 96>}, {transform_indices = @transform_3, window_bounds = array<i64: 16, 96>}]} {
    %c0_i32 = arith.constant 0 : i32
    %0 = arith.cmpi eq, %arg2, %c0_i32 : i32
    %1 = arith.extui %0 : i1 to i32
    %c0_i32_0 = arith.constant 0 : i32
    %2 = arith.cmpi ne, %1, %c0_i32_0 : i32
    scf.if %2 {
      %cst_10 = arith.constant 0.000000e+00 : f32
      %12 = vector.broadcast %cst_10 : f32 to vector<16x96xf32>
      %c0_11 = arith.constant 0 : index
      %c0_12 = arith.constant 0 : index
      %13 = vector.load %arg7[%c0_11, %c0_12] : memref<16x96xf32, #tpu.memory_space<vmem>>, vector<16x96xf32>
      tpu.vector_store %arg7[%c0_11, %c0_12], %12 {strides = array<i32>} : memref<16x96xf32, #tpu.memory_space<vmem>>, vector<16x96xf32>,
    } else {
    }
    %c0 = arith.constant 0 : index
    %c0_1 = arith.constant 0 : index
    %3 = vector.load %arg7[%c0, %c0_1] : memref<16x96xf32, #tpu.memory_space<vmem>>, vector<16x96xf32>
    %c0_2 = arith.constant 0 : index
    %c0_3 = arith.constant 0 : index
    %4 = vector.load %arg3[%c0_2, %c0_3] : memref<16x32xbf16, #tpu.memory_space<vmem>>, vector<16x32xbf16>
    %c0_4 = arith.constant 0 : index
    %c0_5 = arith.constant 0 : index
    %5 = vector.load %arg4[%c0_4, %c0_5] : memref<32x96xbf16, #tpu.memory_space<vmem>>, vector<32x96xbf16>
    %cst = arith.constant dense<0.000000e+00> : vector<16x96xf32>
    %6 = tpu.matmul %4, %5, %cst {dimension_numbers = #tpu.dot_dimension_numbers<[1], [0], [0], [1], [0, 0, 1, 1], [], []>} : vector<16x32xbf16>, vector<32x96xbf16>, vector<16x96xf32> -> vector<16x96xf32>
    %7 = arith.addf %3, %6 : vector<16x96xf32>
    %c0_6 = arith.constant 0 : index
    %c0_7 = arith.constant 0 : index
    %8 = vector.load %arg7[%c0_6, %c0_7] : memref<16x96xf32, #tpu.memory_space<vmem>>, vector<16x96xf32>
    tpu.vector_store %arg7[%c0_6, %c0_7], %7 {strides = array<i32>} : memref<16x96xf32, #tpu.memory_space<vmem>>, vector<16x96xf32>,
    %c0_i32_8 = arith.constant 0 : i32
    %9 = arith.cmpi eq, %arg2, %c0_i32_8 : i32
    %10 = arith.extui %9 : i1 to i32
    %c0_i32_9 = arith.constant 0 : i32
    %11 = arith.cmpi ne, %10, %c0_i32_9 : i32
    scf.if %11 {
      %c0_10 = arith.constant 0 : index
      %c0_11 = arith.constant 0 : index
      %12 = vector.load %arg7[%c0_10, %c0_11] : memref<16x96xf32, #tpu.memory_space<vmem>>, vector<16x96xf32>
      %c0_12 = arith.constant 0 : index
      %c0_13 = arith.constant 0 : index
      %13 = vector.load %arg5[%c0_12, %c0_13] : memref<1x96xf32, #tpu.memory_space<vmem>>, vector<1x96xf32>
      %14 = vector.broadcast %13 : vector<1x96xf32> to vector<16x96xf32>
      %15 = arith.addf %12, %14 : vector<16x96xf32>
      %16 = arith.truncf %15 : vector<16x96xf32> to vector<16x96xbf16>
      %c0_14 = arith.constant 0 : index
      %c0_15 = arith.constant 0 : index
      %17 = vector.load %arg6[%c0_14, %c0_15] : memref<16x96xbf16, #tpu.memory_space<vmem>>, vector<16x96xbf16>
      tpu.vector_store %arg6[%c0_14, %c0_15], %16 {strides = array<i32>} : memref<16x96xbf16, #tpu.memory_space<vmem>>, vector<16x96xbf16>,
    } else {
    }
    return
  }
  func.func @transform_0(%arg0: i32, %arg1: i32, %arg2: i32) -> (i32, i32) {
    %c0_i32 = arith.constant 0 : i32
    return %arg0, %arg2 : i32, i32
  }
  func.func @transform_1(%arg0: i32, %arg1: i32, %arg2: i32) -> (i32, i32) {
    %c0_i32 = arith.constant 0 : i32
    return %arg2, %arg1 : i32, i32
  }
  func.func @transform_2(%arg0: i32, %arg1: i32, %arg2: i32) -> (i32, i32) {
    %c0_i32 = arith.constant 0 : i32
    %c0_i32_0 = arith.constant 0 : i32
    return %c0_i32, %arg1 : i32, i32
  }
  func.func @transform_3(%arg0: i32, %arg1: i32, %arg2: i32) -> (i32, i32) {
    %c0_i32 = arith.constant 0 : i32
    return %arg0, %arg1 : i32, i32
  }
}

module attributes {stable_mosaic.version = 11 : i64} {
  func.func @_matmul_bias_ln_kernel(%arg0: i32, %arg1: i32, %arg2: memref<16x16xbf16, #tpu.memory_space<vmem>>, %arg3: memref<16x32xbf16, #tpu.memory_space<vmem>>, %arg4: memref<1x32xf32, #tpu.memory_space<vmem>>, %arg5: memref<1x32xf32, #tpu.memory_space<vmem>>, %arg6: memref<1x32xf32, #tpu.memory_space<vmem>>, %arg7: memref<16x32xbf16, #tpu.memory_space<vmem>>, %arg8: memref<16x32xf32, #tpu.memory_space<vmem>>) attributes {dimension_semantics = [#tpu.dimension_semantics<parallel>, #tpu.dimension_semantics<arbitrary>], iteration_bounds = array<i64: 1, 1>, scalar_prefetch = 0 : i64, scratch_operands = 1 : i64, tpu.core_type = #tpu.core_type<tc>, window_params = [{transform_indices = @transform_0, window_bounds = array<i64: 16, 16>}, {transform_indices = @transform_1, window_bounds = array<i64: 16, 32>}, {pipeline_mode = #tpu.pipeline_mode<synchronous>, transform_indices = @transform_2, window_bounds = array<i64: 1, 32>}, {pipeline_mode = #tpu.pipeline_mode<synchronous>, transform_indices = @transform_3, window_bounds = array<i64: 1, 32>}, {pipeline_mode = #tpu.pipeline_mode<synchronous>, transform_indices = @transform_4, window_bounds = array<i64: 1, 32>}, {transform_indices = @transform_5, window_bounds = array<i64: 16, 32>}]} {
    %c0_i32 = arith.constant 0 : i32
    %0 = arith.cmpi eq, %arg1, %c0_i32 : i32
    %1 = arith.extui %0 : i1 to i32
    %c0_i32_0 = arith.constant 0 : i32
    %2 = arith.cmpi ne, %1, %c0_i32_0 : i32
    scf.if %2 {
      %cst_10 = arith.constant 0.000000e+00 : f32
      %12 = vector.broadcast %cst_10 : f32 to vector<16x32xf32>
      %c0_11 = arith.constant 0 : index
      %c0_12 = arith.constant 0 : index
      %13 = vector.load %arg8[%c0_11, %c0_12] : memref<16x32xf32, #tpu.memory_space<vmem>>, vector<16x32xf32>
      tpu.vector_store %arg8[%c0_11, %c0_12], %12 {strides = array<i32>} : memref<16x32xf32, #tpu.memory_space<vmem>>, vector<16x32xf32>,
    } else {
    }
    %c0 = arith.constant 0 : index
    %c0_1 = arith.constant 0 : index
    %3 = vector.load %arg8[%c0, %c0_1] : memref<16x32xf32, #tpu.memory_space<vmem>>, vector<16x32xf32>
    %c0_2 = arith.constant 0 : index
    %c0_3 = arith.constant 0 : index
    %4 = vector.load %arg2[%c0_2, %c0_3] : memref<16x16xbf16, #tpu.memory_space<vmem>>, vector<16x16xbf16>
    %c0_4 = arith.constant 0 : index
    %c0_5 = arith.constant 0 : index
    %5 = vector.load %arg3[%c0_4, %c0_5] : memref<16x32xbf16, #tpu.memory_space<vmem>>, vector<16x32xbf16>
    %cst = arith.constant dense<0.000000e+00> : vector<16x32xf32>
    %6 = tpu.matmul %4, %5, %cst {dimension_numbers = #tpu.dot_dimension_numbers<[1], [0], [0], [1], [0, 0, 1, 1], [], []>} : vector<16x16xbf16>, vector<16x32xbf16>, vector<16x32xf32> -> vector<16x32xf32>
    %7 = arith.addf %3, %6 : vector<16x32xf32>
    %c0_6 = arith.constant 0 : index
    %c0_7 = arith.constant 0 : index
    %8 = vector.load %arg8[%c0_6, %c0_7] : memref<16x32xf32, #tpu.memory_space<vmem>>, vector<16x32xf32>
    tpu.vector_store %arg8[%c0_6, %c0_7], %7 {strides = array<i32>} : memref<16x32xf32, #tpu.memory_space<vmem>>, vector<16x32xf32>,
    %c0_i32_8 = arith.constant 0 : i32
    %9 = arith.cmpi eq, %arg1, %c0_i32_8 : i32
    %10 = arith.extui %9 : i1 to i32
    %c0_i32_9 = arith.constant 0 : i32
    %11 = arith.cmpi ne, %10, %c0_i32_9 : i32
    scf.if %11 {
      %c0_10 = arith.constant 0 : index
      %c0_11 = arith.constant 0 : index
      %12 = vector.load %arg8[%c0_10, %c0_11] : memref<16x32xf32, #tpu.memory_space<vmem>>, vector<16x32xf32>
      %c0_12 = arith.constant 0 : index
      %c0_13 = arith.constant 0 : index
      %13 = vector.load %arg4[%c0_12, %c0_13] : memref<1x32xf32, #tpu.memory_space<vmem>>, vector<1x32xf32>
      %14 = vector.broadcast %13 : vector<1x32xf32> to vector<16x32xf32>
      %15 = arith.addf %12, %14 : vector<16x32xf32>
      %cst_14 = arith.constant dense<0.000000e+00> : vector<16xf32>
      %16 = vector.multi_reduction <add>, %15, %cst_14 [1] : vector<16x32xf32> to vector<16xf32>
      %17 = vector.shape_cast %16 : vector<16xf32> to vector<16x1xf32>
      %cst_15 = arith.constant 3.200000e+01 : f32
      %18 = vector.broadcast %cst_15 : f32 to vector<16x1xf32>
      %19 = arith.divf %17, %18 : vector<16x1xf32>
      %20 = vector.broadcast %19 : vector<16x1xf32> to vector<16x32xf32>
      %21 = arith.subf %15, %20 : vector<16x32xf32>
      %22 = arith.mulf %21, %21 : vector<16x32xf32>
      %cst_16 = arith.constant dense<0.000000e+00> : vector<16xf32>
      %23 = vector.multi_reduction <add>, %22, %cst_16 [1] : vector<16x32xf32> to vector<16xf32>
      %24 = vector.shape_cast %23 : vector<16xf32> to vector<16x1xf32>
      %cst_17 = arith.constant 3.200000e+01 : f32
      %25 = vector.broadcast %cst_17 : f32 to vector<16x1xf32>
      %26 = arith.divf %24, %25 : vector<16x1xf32>
      %cst_18 = arith.constant 9.99999974E-6 : f32
      %27 = vector.broadcast %cst_18 : f32 to vector<16x1xf32>
      %28 = arith.addf %26, %27 : vector<16x1xf32>
      %29 = math.rsqrt %28 : vector<16x1xf32>
      %30 = vector.broadcast %19 : vector<16x1xf32> to vector<16x32xf32>
      %31 = arith.subf %15, %30 : vector<16x32xf32>
      %32 = vector.broadcast %29 : vector<16x1xf32> to vector<16x32xf32>
      %33 = arith.mulf %31, %32 : vector<16x32xf32>
      %c0_19 = arith.constant 0 : index
      %c0_20 = arith.constant 0 : index
      %34 = vector.load %arg5[%c0_19, %c0_20] : memref<1x32xf32, #tpu.memory_space<vmem>>, vector<1x32xf32>
      %35 = vector.broadcast %34 : vector<1x32xf32> to vector<16x32xf32>
      %36 = arith.mulf %33, %35 : vector<16x32xf32>
      %c0_21 = arith.constant 0 : index
      %c0_22 = arith.constant 0 : index
      %37 = vector.load %arg6[%c0_21, %c0_22] : memref<1x32xf32, #tpu.memory_space<vmem>>, vector<1x32xf32>
      %38 = vector.broadcast %37 : vector<1x32xf32> to vector<16x32xf32>
      %39 = arith.addf %36, %38 : vector<16x32xf32>
      %40 = arith.truncf %39 : vector<16x32xf32> to vector<16x32xbf16>
      %c0_23 = arith.constant 0 : index
      %c0_24 = arith.constant 0 : index
      %41 = vector.load %arg7[%c0_23, %c0_24] : memref<16x32xbf16, #tpu.memory_space<vmem>>, vector<16x32xbf16>
      tpu.vector_store %arg7[%c0_23, %c0_24], %40 {strides = array<i32>} : memref<16x32xbf16, #tpu.memory_space<vmem>>, vector<16x32xbf16>,
    } else {
    }
    return
  }
  func.func @transform_0(%arg0: i32, %arg1: i32) -> (i32, i32) {
    %c0_i32 = arith.constant 0 : i32
    return %arg0, %arg1 : i32, i32
  }
  func.func @transform_1(%arg0: i32, %arg1: i32) -> (i32, i32) {
    %c0_i32 = arith.constant 0 : i32
    %c0_i32_0 = arith.constant 0 : i32
    return %arg1, %c0_i32 : i32, i32
  }
  func.func @transform_2(%arg0: i32, %arg1: i32) -> (i32, i32) {
    %c0_i32 = arith.constant 0 : i32
    %c0_i32_0 = arith.constant 0 : i32
    %c0_i32_1 = arith.constant 0 : i32
    return %c0_i32, %c0_i32_0 : i32, i32
  }
  func.func @transform_3(%arg0: i32, %arg1: i32) -> (i32, i32) {
    %c0_i32 = arith.constant 0 : i32
    %c0_i32_0 = arith.constant 0 : i32
    %c0_i32_1 = arith.constant 0 : i32
    return %c0_i32, %c0_i32_0 : i32, i32
  }
  func.func @transform_4(%arg0: i32, %arg1: i32) -> (i32, i32) {
    %c0_i32 = arith.constant 0 : i32
    %c0_i32_0 = arith.constant 0 : i32
    %c0_i32_1 = arith.constant 0 : i32
    return %c0_i32, %c0_i32_0 : i32, i32
  }
  func.func @transform_5(%arg0: i32, %arg1: i32) -> (i32, i32) {
    %c0_i32 = arith.constant 0 : i32
    %c0_i32_0 = arith.constant 0 : i32
    return %arg0, %c0_i32 : i32, i32
  }
}

module attributes {stable_mosaic.version = 11 : i64} {
  func.func @_mha_kernel(%arg0: i32, %arg1: memref<16x96xbf16, #tpu.memory_space<vmem>>, %arg2: memref<16x32xbf16, #tpu.memory_space<vmem>>) attributes {dimension_semantics = [#tpu.dimension_semantics<parallel>], iteration_bounds = array<i64: 1>, scalar_prefetch = 0 : i64, scratch_operands = 0 : i64, tpu.core_type = #tpu.core_type<tc>, window_params = [{transform_indices = @transform_0, window_bounds = array<i64: 16, 96>}, {transform_indices = @transform_1, window_bounds = array<i64: 16, 32>}]} {
    %c0 = arith.constant 0 : index
    %c0_0 = arith.constant 0 : index
    %0 = vector.load %arg1[%c0, %c0_0] : memref<16x96xbf16, #tpu.memory_space<vmem>>, vector<8x8xbf16>
    %c0_1 = arith.constant 0 : index
    %c32 = arith.constant 32 : index
    %1 = vector.load %arg1[%c0_1, %c32] : memref<16x96xbf16, #tpu.memory_space<vmem>>, vector<8x8xbf16>
    %c0_2 = arith.constant 0 : index
    %c64 = arith.constant 64 : index
    %2 = vector.load %arg1[%c0_2, %c64] : memref<16x96xbf16, #tpu.memory_space<vmem>>, vector<8x8xbf16>
    %cst = arith.constant dense<0.000000e+00> : vector<8x8xf32>
    %3 = tpu.matmul %0, %1, %cst {dimension_numbers = #tpu.dot_dimension_numbers<[1], [1], [0], [0], [0, 0, 1, 0], [], []>} : vector<8x8xbf16>, vector<8x8xbf16>, vector<8x8xf32> -> vector<8x8xf32>
    %cst_3 = arith.constant 0.353553385 : f32
    %4 = vector.broadcast %cst_3 : f32 to vector<8x8xf32>
    %5 = arith.mulf %3, %4 : vector<8x8xf32>
    %cst_4 = arith.constant dense<0xFF800000> : vector<8xf32>
    %6 = vector.multi_reduction <maximumf>, %5, %cst_4 [1] : vector<8x8xf32> to vector<8xf32>
    %7 = vector.shape_cast %6 : vector<8xf32> to vector<8x1xf32>
    %8 = vector.broadcast %7 : vector<8x1xf32> to vector<8x8xf32>
    %9 = arith.subf %5, %8 : vector<8x8xf32>
    %10 = math.exp %9 : vector<8x8xf32>
    %cst_5 = arith.constant dense<0.000000e+00> : vector<8xf32>
    %11 = vector.multi_reduction <add>, %10, %cst_5 [1] : vector<8x8xf32> to vector<8xf32>
    %12 = vector.shape_cast %11 : vector<8xf32> to vector<8x1xf32>
    %13 = tpu.reciprocal %12 {approx = true} : vector<8x1xf32> -> vector<8x1xf32>
    %14 = vector.broadcast %13 : vector<8x1xf32> to vector<8x8xf32>
    %15 = arith.mulf %10, %14 : vector<8x8xf32>
    %16 = arith.truncf %15 : vector<8x8xf32> to vector<8x8xbf16>
    %cst_6 = arith.constant dense<0.000000e+00> : vector<8x8xf32>
    %17 = tpu.matmul %16, %2, %cst_6 {dimension_numbers = #tpu.dot_dimension_numbers<[1], [0], [0], [1], [0, 0, 1, 1], [], []>} : vector<8x8xbf16>, vector<8x8xbf16>, vector<8x8xf32> -> vector<8x8xf32>
    %c0_7 = arith.constant 0 : index
    %c8 = arith.constant 8 : index
    %18 = vector.load %arg1[%c0_7, %c8] : memref<16x96xbf16, #tpu.memory_space<vmem>>, vector<8x8xbf16>
    %c0_8 = arith.constant 0 : index
    %c40 = arith.constant 40 : index
    %19 = vector.load %arg1[%c0_8, %c40] : memref<16x96xbf16, #tpu.memory_space<vmem>>, vector<8x8xbf16>
    %c0_9 = arith.constant 0 : index
    %c72 = arith.constant 72 : index
    %20 = vector.load %arg1[%c0_9, %c72] : memref<16x96xbf16, #tpu.memory_space<vmem>>, vector<8x8xbf16>
    %cst_10 = arith.constant dense<0.000000e+00> : vector<8x8xf32>
    %21 = tpu.matmul %18, %19, %cst_10 {dimension_numbers = #tpu.dot_dimension_numbers<[1], [1], [0], [0], [0, 0, 1, 0], [], []>} : vector<8x8xbf16>, vector<8x8xbf16>, vector<8x8xf32> -> vector<8x8xf32>
    %cst_11 = arith.constant 0.353553385 : f32
    %22 = vector.broadcast %cst_11 : f32 to vector<8x8xf32>
    %23 = arith.mulf %21, %22 : vector<8x8xf32>
    %cst_12 = arith.constant dense<0xFF800000> : vector<8xf32>
    %24 = vector.multi_reduction <maximumf>, %23, %cst_12 [1] : vector<8x8xf32> to vector<8xf32>
    %25 = vector.shape_cast %24 : vector<8xf32> to vector<8x1xf32>
    %26 = vector.broadcast %25 : vector<8x1xf32> to vector<8x8xf32>
    %27 = arith.subf %23, %26 : vector<8x8xf32>
    %28 = math.exp %27 : vector<8x8xf32>
    %cst_13 = arith.constant dense<0.000000e+00> : vector<8xf32>
    %29 = vector.multi_reduction <add>, %28, %cst_13 [1] : vector<8x8xf32> to vector<8xf32>
    %30 = vector.shape_cast %29 : vector<8xf32> to vector<8x1xf32>
    %31 = tpu.reciprocal %30 {approx = true} : vector<8x1xf32> -> vector<8x1xf32>
    %32 = vector.broadcast %31 : vector<8x1xf32> to vector<8x8xf32>
    %33 = arith.mulf %28, %32 : vector<8x8xf32>
    %34 = arith.truncf %33 : vector<8x8xf32> to vector<8x8xbf16>
    %cst_14 = arith.constant dense<0.000000e+00> : vector<8x8xf32>
    %35 = tpu.matmul %34, %20, %cst_14 {dimension_numbers = #tpu.dot_dimension_numbers<[1], [0], [0], [1], [0, 0, 1, 1], [], []>} : vector<8x8xbf16>, vector<8x8xbf16>, vector<8x8xf32> -> vector<8x8xf32>
    %c0_15 = arith.constant 0 : index
    %c16 = arith.constant 16 : index
    %36 = vector.load %arg1[%c0_15, %c16] : memref<16x96xbf16, #tpu.memory_space<vmem>>, vector<8x8xbf16>
    %c0_16 = arith.constant 0 : index
    %c48 = arith.constant 48 : index
    %37 = vector.load %arg1[%c0_16, %c48] : memref<16x96xbf16, #tpu.memory_space<vmem>>, vector<8x8xbf16>
    %c0_17 = arith.constant 0 : index
    %c80 = arith.constant 80 : index
    %38 = vector.load %arg1[%c0_17, %c80] : memref<16x96xbf16, #tpu.memory_space<vmem>>, vector<8x8xbf16>
    %cst_18 = arith.constant dense<0.000000e+00> : vector<8x8xf32>
    %39 = tpu.matmul %36, %37, %cst_18 {dimension_numbers = #tpu.dot_dimension_numbers<[1], [1], [0], [0], [0, 0, 1, 0], [], []>} : vector<8x8xbf16>, vector<8x8xbf16>, vector<8x8xf32> -> vector<8x8xf32>
    %cst_19 = arith.constant 0.353553385 : f32
    %40 = vector.broadcast %cst_19 : f32 to vector<8x8xf32>
    %41 = arith.mulf %39, %40 : vector<8x8xf32>
    %cst_20 = arith.constant dense<0xFF800000> : vector<8xf32>
    %42 = vector.multi_reduction <maximumf>, %41, %cst_20 [1] : vector<8x8xf32> to vector<8xf32>
    %43 = vector.shape_cast %42 : vector<8xf32> to vector<8x1xf32>
    %44 = vector.broadcast %43 : vector<8x1xf32> to vector<8x8xf32>
    %45 = arith.subf %41, %44 : vector<8x8xf32>
    %46 = math.exp %45 : vector<8x8xf32>
    %cst_21 = arith.constant dense<0.000000e+00> : vector<8xf32>
    %47 = vector.multi_reduction <add>, %46, %cst_21 [1] : vector<8x8xf32> to vector<8xf32>
    %48 = vector.shape_cast %47 : vector<8xf32> to vector<8x1xf32>
    %49 = tpu.reciprocal %48 {approx = true} : vector<8x1xf32> -> vector<8x1xf32>
    %50 = vector.broadcast %49 : vector<8x1xf32> to vector<8x8xf32>
    %51 = arith.mulf %46, %50 : vector<8x8xf32>
    %52 = arith.truncf %51 : vector<8x8xf32> to vector<8x8xbf16>
    %cst_22 = arith.constant dense<0.000000e+00> : vector<8x8xf32>
    %53 = tpu.matmul %52, %38, %cst_22 {dimension_numbers = #tpu.dot_dimension_numbers<[1], [0], [0], [1], [0, 0, 1, 1], [], []>} : vector<8x8xbf16>, vector<8x8xbf16>, vector<8x8xf32> -> vector<8x8xf32>
    %c0_23 = arith.constant 0 : index
    %c24 = arith.constant 24 : index
    %54 = vector.load %arg1[%c0_23, %c24] : memref<16x96xbf16, #tpu.memory_space<vmem>>, vector<8x8xbf16>
    %c0_24 = arith.constant 0 : index
    %c56 = arith.constant 56 : index
    %55 = vector.load %arg1[%c0_24, %c56] : memref<16x96xbf16, #tpu.memory_space<vmem>>, vector<8x8xbf16>
    %c0_25 = arith.constant 0 : index
    %c88 = arith.constant 88 : index
    %56 = vector.load %arg1[%c0_25, %c88] : memref<16x96xbf16, #tpu.memory_space<vmem>>, vector<8x8xbf16>
    %cst_26 = arith.constant dense<0.000000e+00> : vector<8x8xf32>
    %57 = tpu.matmul %54, %55, %cst_26 {dimension_numbers = #tpu.dot_dimension_numbers<[1], [1], [0], [0], [0, 0, 1, 0], [], []>} : vector<8x8xbf16>, vector<8x8xbf16>, vector<8x8xf32> -> vector<8x8xf32>
    %cst_27 = arith.constant 0.353553385 : f32
    %58 = vector.broadcast %cst_27 : f32 to vector<8x8xf32>
    %59 = arith.mulf %57, %58 : vector<8x8xf32>
    %cst_28 = arith.constant dense<0xFF800000> : vector<8xf32>
    %60 = vector.multi_reduction <maximumf>, %59, %cst_28 [1] : vector<8x8xf32> to vector<8xf32>
    %61 = vector.shape_cast %60 : vector<8xf32> to vector<8x1xf32>
    %62 = vector.broadcast %61 : vector<8x1xf32> to vector<8x8xf32>
    %63 = arith.subf %59, %62 : vector<8x8xf32>
    %64 = math.exp %63 : vector<8x8xf32>
    %cst_29 = arith.constant dense<0.000000e+00> : vector<8xf32>
    %65 = vector.multi_reduction <add>, %64, %cst_29 [1] : vector<8x8xf32> to vector<8xf32>
    %66 = vector.shape_cast %65 : vector<8xf32> to vector<8x1xf32>
    %67 = tpu.reciprocal %66 {approx = true} : vector<8x1xf32> -> vector<8x1xf32>
    %68 = vector.broadcast %67 : vector<8x1xf32> to vector<8x8xf32>
    %69 = arith.mulf %64, %68 : vector<8x8xf32>
    %70 = arith.truncf %69 : vector<8x8xf32> to vector<8x8xbf16>
    %cst_30 = arith.constant dense<0.000000e+00> : vector<8x8xf32>
    %71 = tpu.matmul %70, %56, %cst_30 {dimension_numbers = #tpu.dot_dimension_numbers<[1], [0], [0], [1], [0, 0, 1, 1], [], []>} : vector<8x8xbf16>, vector<8x8xbf16>, vector<8x8xf32> -> vector<8x8xf32>
    %72 = tpu.concatenate %17, %35, %53, %71 in 1 : vector<8x8xf32>, vector<8x8xf32>, vector<8x8xf32>, vector<8x8xf32> -> vector<8x32xf32>
    %73 = arith.truncf %72 : vector<8x32xf32> to vector<8x32xbf16>
    %c0_31 = arith.constant 0 : index
    %c0_32 = arith.constant 0 : index
    %74 = vector.load %arg2[%c0_31, %c0_32] : memref<16x32xbf16, #tpu.memory_space<vmem>>, vector<8x32xbf16>
    tpu.vector_store %arg2[%c0_31, %c0_32], %73 {strides = array<i32>} : memref<16x32xbf16, #tpu.memory_space<vmem>>, vector<8x32xbf16>,
    %c8_33 = arith.constant 8 : index
    %c0_34 = arith.constant 0 : index
    %75 = vector.load %arg1[%c8_33, %c0_34] : memref<16x96xbf16, #tpu.memory_space<vmem>>, vector<8x8xbf16>
    %c8_35 = arith.constant 8 : index
    %c32_36 = arith.constant 32 : index
    %76 = vector.load %arg1[%c8_35, %c32_36] : memref<16x96xbf16, #tpu.memory_space<vmem>>, vector<8x8xbf16>
    %c8_37 = arith.constant 8 : index
    %c64_38 = arith.constant 64 : index
    %77 = vector.load %arg1[%c8_37, %c64_38] : memref<16x96xbf16, #tpu.memory_space<vmem>>, vector<8x8xbf16>
    %cst_39 = arith.constant dense<0.000000e+00> : vector<8x8xf32>
    %78 = tpu.matmul %75, %76, %cst_39 {dimension_numbers = #tpu.dot_dimension_numbers<[1], [1], [0], [0], [0, 0, 1, 0], [], []>} : vector<8x8xbf16>, vector<8x8xbf16>, vector<8x8xf32> -> vector<8x8xf32>
    %cst_40 = arith.constant 0.353553385 : f32
    %79 = vector.broadcast %cst_40 : f32 to vector<8x8xf32>
    %80 = arith.mulf %78, %79 : vector<8x8xf32>
    %cst_41 = arith.constant dense<0xFF800000> : vector<8xf32>
    %81 = vector.multi_reduction <maximumf>, %80, %cst_41 [1] : vector<8x8xf32> to vector<8xf32>
    %82 = vector.shape_cast %81 : vector<8xf32> to vector<8x1xf32>
    %83 = vector.broadcast %82 : vector<8x1xf32> to vector<8x8xf32>
    %84 = arith.subf %80, %83 : vector<8x8xf32>
    %85 = math.exp %84 : vector<8x8xf32>
    %cst_42 = arith.constant dense<0.000000e+00> : vector<8xf32>
    %86 = vector.multi_reduction <add>, %85, %cst_42 [1] : vector<8x8xf32> to vector<8xf32>
    %87 = vector.shape_cast %86 : vector<8xf32> to vector<8x1xf32>
    %88 = tpu.reciprocal %87 {approx = true} : vector<8x1xf32> -> vector<8x1xf32>
    %89 = vector.broadcast %88 : vector<8x1xf32> to vector<8x8xf32>
    %90 = arith.mulf %85, %89 : vector<8x8xf32>
    %91 = arith.truncf %90 : vector<8x8xf32> to vector<8x8xbf16>
    %cst_43 = arith.constant dense<0.000000e+00> : vector<8x8xf32>
    %92 = tpu.matmul %91, %77, %cst_43 {dimension_numbers = #tpu.dot_dimension_numbers<[1], [0], [0], [1], [0, 0, 1, 1], [], []>} : vector<8x8xbf16>, vector<8x8xbf16>, vector<8x8xf32> -> vector<8x8xf32>
    %c8_44 = arith.constant 8 : index
    %c8_45 = arith.constant 8 : index
    %93 = vector.load %arg1[%c8_44, %c8_45] : memref<16x96xbf16, #tpu.memory_space<vmem>>, vector<8x8xbf16>
    %c8_46 = arith.constant 8 : index
    %c40_47 = arith.constant 40 : index
    %94 = vector.load %arg1[%c8_46, %c40_47] : memref<16x96xbf16, #tpu.memory_space<vmem>>, vector<8x8xbf16>
    %c8_48 = arith.constant 8 : index
    %c72_49 = arith.constant 72 : index
    %95 = vector.load %arg1[%c8_48, %c72_49] : memref<16x96xbf16, #tpu.memory_space<vmem>>, vector<8x8xbf16>
    %cst_50 = arith.constant dense<0.000000e+00> : vector<8x8xf32>
    %96 = tpu.matmul %93, %94, %cst_50 {dimension_numbers = #tpu.dot_dimension_numbers<[1], [1], [0], [0], [0, 0, 1, 0], [], []>} : vector<8x8xbf16>, vector<8x8xbf16>, vector<8x8xf32> -> vector<8x8xf32>
    %cst_51 = arith.constant 0.353553385 : f32
    %97 = vector.broadcast %cst_51 : f32 to vector<8x8xf32>
    %98 = arith.mulf %96, %97 : vector<8x8xf32>
    %cst_52 = arith.constant dense<0xFF800000> : vector<8xf32>
    %99 = vector.multi_reduction <maximumf>, %98, %cst_52 [1] : vector<8x8xf32> to vector<8xf32>
    %100 = vector.shape_cast %99 : vector<8xf32> to vector<8x1xf32>
    %101 = vector.broadcast %100 : vector<8x1xf32> to vector<8x8xf32>
    %102 = arith.subf %98, %101 : vector<8x8xf32>
    %103 = math.exp %102 : vector<8x8xf32>
    %cst_53 = arith.constant dense<0.000000e+00> : vector<8xf32>
    %104 = vector.multi_reduction <add>, %103, %cst_53 [1] : vector<8x8xf32> to vector<8xf32>
    %105 = vector.shape_cast %104 : vector<8xf32> to vector<8x1xf32>
    %106 = tpu.reciprocal %105 {approx = true} : vector<8x1xf32> -> vector<8x1xf32>
    %107 = vector.broadcast %106 : vector<8x1xf32> to vector<8x8xf32>
    %108 = arith.mulf %103, %107 : vector<8x8xf32>
    %109 = arith.truncf %108 : vector<8x8xf32> to vector<8x8xbf16>
    %cst_54 = arith.constant dense<0.000000e+00> : vector<8x8xf32>
    %110 = tpu.matmul %109, %95, %cst_54 {dimension_numbers = #tpu.dot_dimension_numbers<[1], [0], [0], [1], [0, 0, 1, 1], [], []>} : vector<8x8xbf16>, vector<8x8xbf16>, vector<8x8xf32> -> vector<8x8xf32>
    %c8_55 = arith.constant 8 : index
    %c16_56 = arith.constant 16 : index
    %111 = vector.load %arg1[%c8_55, %c16_56] : memref<16x96xbf16, #tpu.memory_space<vmem>>, vector<8x8xbf16>
    %c8_57 = arith.constant 8 : index
    %c48_58 = arith.constant 48 : index
    %112 = vector.load %arg1[%c8_57, %c48_58] : memref<16x96xbf16, #tpu.memory_space<vmem>>, vector<8x8xbf16>
    %c8_59 = arith.constant 8 : index
    %c80_60 = arith.constant 80 : index
    %113 = vector.load %arg1[%c8_59, %c80_60] : memref<16x96xbf16, #tpu.memory_space<vmem>>, vector<8x8xbf16>
    %cst_61 = arith.constant dense<0.000000e+00> : vector<8x8xf32>
    %114 = tpu.matmul %111, %112, %cst_61 {dimension_numbers = #tpu.dot_dimension_numbers<[1], [1], [0], [0], [0, 0, 1, 0], [], []>} : vector<8x8xbf16>, vector<8x8xbf16>, vector<8x8xf32> -> vector<8x8xf32>
    %cst_62 = arith.constant 0.353553385 : f32
    %115 = vector.broadcast %cst_62 : f32 to vector<8x8xf32>
    %116 = arith.mulf %114, %115 : vector<8x8xf32>
    %cst_63 = arith.constant dense<0xFF800000> : vector<8xf32>
    %117 = vector.multi_reduction <maximumf>, %116, %cst_63 [1] : vector<8x8xf32> to vector<8xf32>
    %118 = vector.shape_cast %117 : vector<8xf32> to vector<8x1xf32>
    %119 = vector.broadcast %118 : vector<8x1xf32> to vector<8x8xf32>
    %120 = arith.subf %116, %119 : vector<8x8xf32>
    %121 = math.exp %120 : vector<8x8xf32>
    %cst_64 = arith.constant dense<0.000000e+00> : vector<8xf32>
    %122 = vector.multi_reduction <add>, %121, %cst_64 [1] : vector<8x8xf32> to vector<8xf32>
    %123 = vector.shape_cast %122 : vector<8xf32> to vector<8x1xf32>
    %124 = tpu.reciprocal %123 {approx = true} : vector<8x1xf32> -> vector<8x1xf32>
    %125 = vector.broadcast %124 : vector<8x1xf32> to vector<8x8xf32>
    %126 = arith.mulf %121, %125 : vector<8x8xf32>
    %127 = arith.truncf %126 : vector<8x8xf32> to vector<8x8xbf16>
    %cst_65 = arith.constant dense<0.000000e+00> : vector<8x8xf32>
    %128 = tpu.matmul %127, %113, %cst_65 {dimension_numbers = #tpu.dot_dimension_numbers<[1], [0], [0], [1], [0, 0, 1, 1], [], []>} : vector<8x8xbf16>, vector<8x8xbf16>, vector<8x8xf32> -> vector<8x8xf32>
    %c8_66 = arith.constant 8 : index
    %c24_67 = arith.constant 24 : index
    %129 = vector.load %arg1[%c8_66, %c24_67] : memref<16x96xbf16, #tpu.memory_space<vmem>>, vector<8x8xbf16>
    %c8_68 = arith.constant 8 : index
    %c56_69 = arith.constant 56 : index
    %130 = vector.load %arg1[%c8_68, %c56_69] : memref<16x96xbf16, #tpu.memory_space<vmem>>, vector<8x8xbf16>
    %c8_70 = arith.constant 8 : index
    %c88_71 = arith.constant 88 : index
    %131 = vector.load %arg1[%c8_70, %c88_71] : memref<16x96xbf16, #tpu.memory_space<vmem>>, vector<8x8xbf16>
    %cst_72 = arith.constant dense<0.000000e+00> : vector<8x8xf32>
    %132 = tpu.matmul %129, %130, %cst_72 {dimension_numbers = #tpu.dot_dimension_numbers<[1], [1], [0], [0], [0, 0, 1, 0], [], []>} : vector<8x8xbf16>, vector<8x8xbf16>, vector<8x8xf32> -> vector<8x8xf32>
    %cst_73 = arith.constant 0.353553385 : f32
    %133 = vector.broadcast %cst_73 : f32 to vector<8x8xf32>
    %134 = arith.mulf %132, %133 : vector<8x8xf32>
    %cst_74 = arith.constant dense<0xFF800000> : vector<8xf32>
    %135 = vector.multi_reduction <maximumf>, %134, %cst_74 [1] : vector<8x8xf32> to vector<8xf32>
    %136 = vector.shape_cast %135 : vector<8xf32> to vector<8x1xf32>
    %137 = vector.broadcast %136 : vector<8x1xf32> to vector<8x8xf32>
    %138 = arith.subf %134, %137 : vector<8x8xf32>
    %139 = math.exp %138 : vector<8x8xf32>
    %cst_75 = arith.constant dense<0.000000e+00> : vector<8xf32>
    %140 = vector.multi_reduction <add>, %139, %cst_75 [1] : vector<8x8xf32> to vector<8xf32>
    %141 = vector.shape_cast %140 : vector<8xf32> to vector<8x1xf32>
    %142 = tpu.reciprocal %141 {approx = true} : vector<8x1xf32> -> vector<8x1xf32>
    %143 = vector.broadcast %142 : vector<8x1xf32> to vector<8x8xf32>
    %144 = arith.mulf %139, %143 : vector<8x8xf32>
    %145 = arith.truncf %144 : vector<8x8xf32> to vector<8x8xbf16>
    %cst_76 = arith.constant dense<0.000000e+00> : vector<8x8xf32>
    %146 = tpu.matmul %145, %131, %cst_76 {dimension_numbers = #tpu.dot_dimension_numbers<[1], [0], [0], [1], [0, 0, 1, 1], [], []>} : vector<8x8xbf16>, vector<8x8xbf16>, vector<8x8xf32> -> vector<8x8xf32>
    %147 = tpu.concatenate %92, %110, %128, %146 in 1 : vector<8x8xf32>, vector<8x8xf32>, vector<8x8xf32>, vector<8x8xf32> -> vector<8x32xf32>
    %148 = arith.truncf %147 : vector<8x32xf32> to vector<8x32xbf16>
    %c8_77 = arith.constant 8 : index
    %c0_78 = arith.constant 0 : index
    %149 = vector.load %arg2[%c8_77, %c0_78] : memref<16x32xbf16, #tpu.memory_space<vmem>>, vector<8x32xbf16>
    tpu.vector_store %arg2[%c8_77, %c0_78], %148 {strides = array<i32>} : memref<16x32xbf16, #tpu.memory_space<vmem>>, vector<8x32xbf16>,
    return
  }
  func.func @transform_0(%arg0: i32) -> (i32, i32) {
    %c0_i32 = arith.constant 0 : i32
    %c0_i32_0 = arith.constant 0 : i32
    return %arg0, %c0_i32 : i32, i32
  }
  func.func @transform_1(%arg0: i32) -> (i32, i32) {
    %c0_i32 = arith.constant 0 : i32
    %c0_i32_0 = arith.constant 0 : i32
    return %arg0, %c0_i32 : i32, i32
  }
}

module attributes {stable_mosaic.version = 11 : i64} {
  func.func @_matmul_bias_ln_kernel(%arg0: i32, %arg1: i32, %arg2: memref<16x32xbf16, #tpu.memory_space<vmem>>, %arg3: memref<32x32xbf16, #tpu.memory_space<vmem>>, %arg4: memref<1x32xf32, #tpu.memory_space<vmem>>, %arg5: memref<16x32xbf16, #tpu.memory_space<vmem>>, %arg6: memref<1x32xf32, #tpu.memory_space<vmem>>, %arg7: memref<1x32xf32, #tpu.memory_space<vmem>>, %arg8: memref<16x32xbf16, #tpu.memory_space<vmem>>, %arg9: memref<16x32xf32, #tpu.memory_space<vmem>>) attributes {dimension_semantics = [#tpu.dimension_semantics<parallel>, #tpu.dimension_semantics<arbitrary>], iteration_bounds = array<i64: 1, 1>, scalar_prefetch = 0 : i64, scratch_operands = 1 : i64, tpu.core_type = #tpu.core_type<tc>, window_params = [{transform_indices = @transform_0, window_bounds = array<i64: 16, 32>}, {transform_indices = @transform_1, window_bounds = array<i64: 32, 32>}, {pipeline_mode = #tpu.pipeline_mode<synchronous>, transform_indices = @transform_2, window_bounds = array<i64: 1, 32>}, {transform_indices = @transform_3, window_bounds = array<i64: 16, 32>}, {pipeline_mode = #tpu.pipeline_mode<synchronous>, transform_indices = @transform_4, window_bounds = array<i64: 1, 32>}, {pipeline_mode = #tpu.pipeline_mode<synchronous>, transform_indices = @transform_5, window_bounds = array<i64: 1, 32>}, {transform_indices = @transform_6, window_bounds = array<i64: 16, 32>}]} {
    %c0_i32 = arith.constant 0 : i32
    %0 = arith.cmpi eq, %arg1, %c0_i32 : i32
    %1 = arith.extui %0 : i1 to i32
    %c0_i32_0 = arith.constant 0 : i32
    %2 = arith.cmpi ne, %1, %c0_i32_0 : i32
    scf.if %2 {
      %cst_10 = arith.constant 0.000000e+00 : f32
      %12 = vector.broadcast %cst_10 : f32 to vector<16x32xf32>
      %c0_11 = arith.constant 0 : index
      %c0_12 = arith.constant 0 : index
      %13 = vector.load %arg9[%c0_11, %c0_12] : memref<16x32xf32, #tpu.memory_space<vmem>>, vector<16x32xf32>
      tpu.vector_store %arg9[%c0_11, %c0_12], %12 {strides = array<i32>} : memref<16x32xf32, #tpu.memory_space<vmem>>, vector<16x32xf32>,
    } else {
    }
    %c0 = arith.constant 0 : index
    %c0_1 = arith.constant 0 : index
    %3 = vector.load %arg9[%c0, %c0_1] : memref<16x32xf32, #tpu.memory_space<vmem>>, vector<16x32xf32>
    %c0_2 = arith.constant 0 : index
    %c0_3 = arith.constant 0 : index
    %4 = vector.load %arg2[%c0_2, %c0_3] : memref<16x32xbf16, #tpu.memory_space<vmem>>, vector<16x32xbf16>
    %c0_4 = arith.constant 0 : index
    %c0_5 = arith.constant 0 : index
    %5 = vector.load %arg3[%c0_4, %c0_5] : memref<32x32xbf16, #tpu.memory_space<vmem>>, vector<32x32xbf16>
    %cst = arith.constant dense<0.000000e+00> : vector<16x32xf32>
    %6 = tpu.matmul %4, %5, %cst {dimension_numbers = #tpu.dot_dimension_numbers<[1], [0], [0], [1], [0, 0, 1, 1], [], []>} : vector<16x32xbf16>, vector<32x32xbf16>, vector<16x32xf32> -> vector<16x32xf32>
    %7 = arith.addf %3, %6 : vector<16x32xf32>
    %c0_6 = arith.constant 0 : index
    %c0_7 = arith.constant 0 : index
    %8 = vector.load %arg9[%c0_6, %c0_7] : memref<16x32xf32, #tpu.memory_space<vmem>>, vector<16x32xf32>
    tpu.vector_store %arg9[%c0_6, %c0_7], %7 {strides = array<i32>} : memref<16x32xf32, #tpu.memory_space<vmem>>, vector<16x32xf32>,
    %c0_i32_8 = arith.constant 0 : i32
    %9 = arith.cmpi eq, %arg1, %c0_i32_8 : i32
    %10 = arith.extui %9 : i1 to i32
    %c0_i32_9 = arith.constant 0 : i32
    %11 = arith.cmpi ne, %10, %c0_i32_9 : i32
    scf.if %11 {
      %c0_10 = arith.constant 0 : index
      %c0_11 = arith.constant 0 : index
      %12 = vector.load %arg9[%c0_10, %c0_11] : memref<16x32xf32, #tpu.memory_space<vmem>>, vector<16x32xf32>
      %c0_12 = arith.constant 0 : index
      %c0_13 = arith.constant 0 : index
      %13 = vector.load %arg4[%c0_12, %c0_13] : memref<1x32xf32, #tpu.memory_space<vmem>>, vector<1x32xf32>
      %14 = vector.broadcast %13 : vector<1x32xf32> to vector<16x32xf32>
      %15 = arith.addf %12, %14 : vector<16x32xf32>
      %c0_14 = arith.constant 0 : index
      %c0_15 = arith.constant 0 : index
      %16 = vector.load %arg5[%c0_14, %c0_15] : memref<16x32xbf16, #tpu.memory_space<vmem>>, vector<16x32xbf16>
      %17 = arith.extf %16 : vector<16x32xbf16> to vector<16x32xf32>
      %18 = arith.addf %15, %17 : vector<16x32xf32>
      %cst_16 = arith.constant dense<0.000000e+00> : vector<16xf32>
      %19 = vector.multi_reduction <add>, %18, %cst_16 [1] : vector<16x32xf32> to vector<16xf32>
      %20 = vector.shape_cast %19 : vector<16xf32> to vector<16x1xf32>
      %cst_17 = arith.constant 3.200000e+01 : f32
      %21 = vector.broadcast %cst_17 : f32 to vector<16x1xf32>
      %22 = arith.divf %20, %21 : vector<16x1xf32>
      %23 = vector.broadcast %22 : vector<16x1xf32> to vector<16x32xf32>
      %24 = arith.subf %18, %23 : vector<16x32xf32>
      %25 = arith.mulf %24, %24 : vector<16x32xf32>
      %cst_18 = arith.constant dense<0.000000e+00> : vector<16xf32>
      %26 = vector.multi_reduction <add>, %25, %cst_18 [1] : vector<16x32xf32> to vector<16xf32>
      %27 = vector.shape_cast %26 : vector<16xf32> to vector<16x1xf32>
      %cst_19 = arith.constant 3.200000e+01 : f32
      %28 = vector.broadcast %cst_19 : f32 to vector<16x1xf32>
      %29 = arith.divf %27, %28 : vector<16x1xf32>
      %cst_20 = arith.constant 9.99999974E-6 : f32
      %30 = vector.broadcast %cst_20 : f32 to vector<16x1xf32>
      %31 = arith.addf %29, %30 : vector<16x1xf32>
      %32 = math.rsqrt %31 : vector<16x1xf32>
      %33 = vector.broadcast %22 : vector<16x1xf32> to vector<16x32xf32>
      %34 = arith.subf %18, %33 : vector<16x32xf32>
      %35 = vector.broadcast %32 : vector<16x1xf32> to vector<16x32xf32>
      %36 = arith.mulf %34, %35 : vector<16x32xf32>
      %c0_21 = arith.constant 0 : index
      %c0_22 = arith.constant 0 : index
      %37 = vector.load %arg6[%c0_21, %c0_22] : memref<1x32xf32, #tpu.memory_space<vmem>>, vector<1x32xf32>
      %38 = vector.broadcast %37 : vector<1x32xf32> to vector<16x32xf32>
      %39 = arith.mulf %36, %38 : vector<16x32xf32>
      %c0_23 = arith.constant 0 : index
      %c0_24 = arith.constant 0 : index
      %40 = vector.load %arg7[%c0_23, %c0_24] : memref<1x32xf32, #tpu.memory_space<vmem>>, vector<1x32xf32>
      %41 = vector.broadcast %40 : vector<1x32xf32> to vector<16x32xf32>
      %42 = arith.addf %39, %41 : vector<16x32xf32>
      %43 = arith.truncf %42 : vector<16x32xf32> to vector<16x32xbf16>
      %c0_25 = arith.constant 0 : index
      %c0_26 = arith.constant 0 : index
      %44 = vector.load %arg8[%c0_25, %c0_26] : memref<16x32xbf16, #tpu.memory_space<vmem>>, vector<16x32xbf16>
      tpu.vector_store %arg8[%c0_25, %c0_26], %43 {strides = array<i32>} : memref<16x32xbf16, #tpu.memory_space<vmem>>, vector<16x32xbf16>,
    } else {
    }
    return
  }
  func.func @transform_0(%arg0: i32, %arg1: i32) -> (i32, i32) {
    %c0_i32 = arith.constant 0 : i32
    return %arg0, %arg1 : i32, i32
  }
  func.func @transform_1(%arg0: i32, %arg1: i32) -> (i32, i32) {
    %c0_i32 = arith.constant 0 : i32
    %c0_i32_0 = arith.constant 0 : i32
    return %arg1, %c0_i32 : i32, i32
  }
  func.func @transform_2(%arg0: i32, %arg1: i32) -> (i32, i32) {
    %c0_i32 = arith.constant 0 : i32
    %c0_i32_0 = arith.constant 0 : i32
    %c0_i32_1 = arith.constant 0 : i32
    return %c0_i32, %c0_i32_0 : i32, i32
  }
  func.func @transform_3(%arg0: i32, %arg1: i32) -> (i32, i32) {
    %c0_i32 = arith.constant 0 : i32
    %c0_i32_0 = arith.constant 0 : i32
    return %arg0, %c0_i32 : i32, i32
  }
  func.func @transform_4(%arg0: i32, %arg1: i32) -> (i32, i32) {
    %c0_i32 = arith.constant 0 : i32
    %c0_i32_0 = arith.constant 0 : i32
    %c0_i32_1 = arith.constant 0 : i32
    return %c0_i32, %c0_i32_0 : i32, i32
  }
  func.func @transform_5(%arg0: i32, %arg1: i32) -> (i32, i32) {
    %c0_i32 = arith.constant 0 : i32
    %c0_i32_0 = arith.constant 0 : i32
    %c0_i32_1 = arith.constant 0 : i32
    return %c0_i32, %c0_i32_0 : i32, i32
  }
  func.func @transform_6(%arg0: i32, %arg1: i32) -> (i32, i32) {
    %c0_i32 = arith.constant 0 : i32
    %c0_i32_0 = arith.constant 0 : i32
    return %arg0, %c0_i32 : i32, i32
  }
}

module attributes {stable_mosaic.version = 11 : i64} {
  func.func @_matmul_bias_kernel(%arg0: i32, %arg1: i32, %arg2: i32, %arg3: memref<16x32xbf16, #tpu.memory_space<vmem>>, %arg4: memref<32x64xbf16, #tpu.memory_space<vmem>>, %arg5: memref<1x64xf32, #tpu.memory_space<vmem>>, %arg6: memref<16x64xbf16, #tpu.memory_space<vmem>>, %arg7: memref<16x64xf32, #tpu.memory_space<vmem>>) attributes {dimension_semantics = [#tpu.dimension_semantics<parallel>, #tpu.dimension_semantics<parallel>, #tpu.dimension_semantics<arbitrary>], iteration_bounds = array<i64: 1, 1, 1>, scalar_prefetch = 0 : i64, scratch_operands = 1 : i64, tpu.core_type = #tpu.core_type<tc>, window_params = [{transform_indices = @transform_0, window_bounds = array<i64: 16, 32>}, {transform_indices = @transform_1, window_bounds = array<i64: 32, 64>}, {transform_indices = @transform_2, window_bounds = array<i64: 1, 64>}, {transform_indices = @transform_3, window_bounds = array<i64: 16, 64>}]} {
    %c0_i32 = arith.constant 0 : i32
    %0 = arith.cmpi eq, %arg2, %c0_i32 : i32
    %1 = arith.extui %0 : i1 to i32
    %c0_i32_0 = arith.constant 0 : i32
    %2 = arith.cmpi ne, %1, %c0_i32_0 : i32
    scf.if %2 {
      %cst_10 = arith.constant 0.000000e+00 : f32
      %12 = vector.broadcast %cst_10 : f32 to vector<16x64xf32>
      %c0_11 = arith.constant 0 : index
      %c0_12 = arith.constant 0 : index
      %13 = vector.load %arg7[%c0_11, %c0_12] : memref<16x64xf32, #tpu.memory_space<vmem>>, vector<16x64xf32>
      tpu.vector_store %arg7[%c0_11, %c0_12], %12 {strides = array<i32>} : memref<16x64xf32, #tpu.memory_space<vmem>>, vector<16x64xf32>,
    } else {
    }
    %c0 = arith.constant 0 : index
    %c0_1 = arith.constant 0 : index
    %3 = vector.load %arg7[%c0, %c0_1] : memref<16x64xf32, #tpu.memory_space<vmem>>, vector<16x64xf32>
    %c0_2 = arith.constant 0 : index
    %c0_3 = arith.constant 0 : index
    %4 = vector.load %arg3[%c0_2, %c0_3] : memref<16x32xbf16, #tpu.memory_space<vmem>>, vector<16x32xbf16>
    %c0_4 = arith.constant 0 : index
    %c0_5 = arith.constant 0 : index
    %5 = vector.load %arg4[%c0_4, %c0_5] : memref<32x64xbf16, #tpu.memory_space<vmem>>, vector<32x64xbf16>
    %cst = arith.constant dense<0.000000e+00> : vector<16x64xf32>
    %6 = tpu.matmul %4, %5, %cst {dimension_numbers = #tpu.dot_dimension_numbers<[1], [0], [0], [1], [0, 0, 1, 1], [], []>} : vector<16x32xbf16>, vector<32x64xbf16>, vector<16x64xf32> -> vector<16x64xf32>
    %7 = arith.addf %3, %6 : vector<16x64xf32>
    %c0_6 = arith.constant 0 : index
    %c0_7 = arith.constant 0 : index
    %8 = vector.load %arg7[%c0_6, %c0_7] : memref<16x64xf32, #tpu.memory_space<vmem>>, vector<16x64xf32>
    tpu.vector_store %arg7[%c0_6, %c0_7], %7 {strides = array<i32>} : memref<16x64xf32, #tpu.memory_space<vmem>>, vector<16x64xf32>,
    %c0_i32_8 = arith.constant 0 : i32
    %9 = arith.cmpi eq, %arg2, %c0_i32_8 : i32
    %10 = arith.extui %9 : i1 to i32
    %c0_i32_9 = arith.constant 0 : i32
    %11 = arith.cmpi ne, %10, %c0_i32_9 : i32
    scf.if %11 {
      %c0_10 = arith.constant 0 : index
      %c0_11 = arith.constant 0 : index
      %12 = vector.load %arg7[%c0_10, %c0_11] : memref<16x64xf32, #tpu.memory_space<vmem>>, vector<16x64xf32>
      %c0_12 = arith.constant 0 : index
      %c0_13 = arith.constant 0 : index
      %13 = vector.load %arg5[%c0_12, %c0_13] : memref<1x64xf32, #tpu.memory_space<vmem>>, vector<1x64xf32>
      %14 = vector.broadcast %13 : vector<1x64xf32> to vector<16x64xf32>
      %15 = arith.addf %12, %14 : vector<16x64xf32>
      %cst_14 = arith.constant 0.000000e+00 : f32
      %16 = vector.broadcast %cst_14 : f32 to vector<16x64xf32>
      %17 = arith.maximumf %15, %16 : vector<16x64xf32>
      %18 = arith.truncf %17 : vector<16x64xf32> to vector<16x64xbf16>
      %c0_15 = arith.constant 0 : index
      %c0_16 = arith.constant 0 : index
      %19 = vector.load %arg6[%c0_15, %c0_16] : memref<16x64xbf16, #tpu.memory_space<vmem>>, vector<16x64xbf16>
      tpu.vector_store %arg6[%c0_15, %c0_16], %18 {strides = array<i32>} : memref<16x64xbf16, #tpu.memory_space<vmem>>, vector<16x64xbf16>,
    } else {
    }
    return
  }
  func.func @transform_0(%arg0: i32, %arg1: i32, %arg2: i32) -> (i32, i32) {
    %c0_i32 = arith.constant 0 : i32
    return %arg0, %arg2 : i32, i32
  }
  func.func @transform_1(%arg0: i32, %arg1: i32, %arg2: i32) -> (i32, i32) {
    %c0_i32 = arith.constant 0 : i32
    return %arg2, %arg1 : i32, i32
  }
  func.func @transform_2(%arg0: i32, %arg1: i32, %arg2: i32) -> (i32, i32) {
    %c0_i32 = arith.constant 0 : i32
    %c0_i32_0 = arith.constant 0 : i32
    return %c0_i32, %arg1 : i32, i32
  }
  func.func @transform_3(%arg0: i32, %arg1: i32, %arg2: i32) -> (i32, i32) {
    %c0_i32 = arith.constant 0 : i32
    return %arg0, %arg1 : i32, i32
  }
}

module attributes {stable_mosaic.version = 11 : i64} {
  func.func @_matmul_bias_kernel(%arg0: i32, %arg1: i32, %arg2: i32, %arg3: memref<16x32xbf16, #tpu.memory_space<vmem>>, %arg4: memref<32x16xbf16, #tpu.memory_space<vmem>>, %arg5: memref<1x16xf32, #tpu.memory_space<vmem>>, %arg6: memref<16x16xf32, #tpu.memory_space<vmem>>, %arg7: memref<16x16xf32, #tpu.memory_space<vmem>>) attributes {dimension_semantics = [#tpu.dimension_semantics<parallel>, #tpu.dimension_semantics<parallel>, #tpu.dimension_semantics<arbitrary>], iteration_bounds = array<i64: 1, 1, 1>, scalar_prefetch = 0 : i64, scratch_operands = 1 : i64, tpu.core_type = #tpu.core_type<tc>, window_params = [{transform_indices = @transform_0, window_bounds = array<i64: 16, 32>}, {transform_indices = @transform_1, window_bounds = array<i64: 32, 16>}, {transform_indices = @transform_2, window_bounds = array<i64: 1, 16>}, {transform_indices = @transform_3, window_bounds = array<i64: 16, 16>}]} {
    %c0_i32 = arith.constant 0 : i32
    %0 = arith.cmpi eq, %arg2, %c0_i32 : i32
    %1 = arith.extui %0 : i1 to i32
    %c0_i32_0 = arith.constant 0 : i32
    %2 = arith.cmpi ne, %1, %c0_i32_0 : i32
    scf.if %2 {
      %cst_10 = arith.constant 0.000000e+00 : f32
      %12 = vector.broadcast %cst_10 : f32 to vector<16x16xf32>
      %c0_11 = arith.constant 0 : index
      %c0_12 = arith.constant 0 : index
      %13 = vector.load %arg7[%c0_11, %c0_12] : memref<16x16xf32, #tpu.memory_space<vmem>>, vector<16x16xf32>
      tpu.vector_store %arg7[%c0_11, %c0_12], %12 {strides = array<i32>} : memref<16x16xf32, #tpu.memory_space<vmem>>, vector<16x16xf32>,
    } else {
    }
    %c0 = arith.constant 0 : index
    %c0_1 = arith.constant 0 : index
    %3 = vector.load %arg7[%c0, %c0_1] : memref<16x16xf32, #tpu.memory_space<vmem>>, vector<16x16xf32>
    %c0_2 = arith.constant 0 : index
    %c0_3 = arith.constant 0 : index
    %4 = vector.load %arg3[%c0_2, %c0_3] : memref<16x32xbf16, #tpu.memory_space<vmem>>, vector<16x32xbf16>
    %c0_4 = arith.constant 0 : index
    %c0_5 = arith.constant 0 : index
    %5 = vector.load %arg4[%c0_4, %c0_5] : memref<32x16xbf16, #tpu.memory_space<vmem>>, vector<32x16xbf16>
    %cst = arith.constant dense<0.000000e+00> : vector<16x16xf32>
    %6 = tpu.matmul %4, %5, %cst {dimension_numbers = #tpu.dot_dimension_numbers<[1], [0], [0], [1], [0, 0, 1, 1], [], []>} : vector<16x32xbf16>, vector<32x16xbf16>, vector<16x16xf32> -> vector<16x16xf32>
    %7 = arith.addf %3, %6 : vector<16x16xf32>
    %c0_6 = arith.constant 0 : index
    %c0_7 = arith.constant 0 : index
    %8 = vector.load %arg7[%c0_6, %c0_7] : memref<16x16xf32, #tpu.memory_space<vmem>>, vector<16x16xf32>
    tpu.vector_store %arg7[%c0_6, %c0_7], %7 {strides = array<i32>} : memref<16x16xf32, #tpu.memory_space<vmem>>, vector<16x16xf32>,
    %c0_i32_8 = arith.constant 0 : i32
    %9 = arith.cmpi eq, %arg2, %c0_i32_8 : i32
    %10 = arith.extui %9 : i1 to i32
    %c0_i32_9 = arith.constant 0 : i32
    %11 = arith.cmpi ne, %10, %c0_i32_9 : i32
    scf.if %11 {
      %c0_10 = arith.constant 0 : index
      %c0_11 = arith.constant 0 : index
      %12 = vector.load %arg7[%c0_10, %c0_11] : memref<16x16xf32, #tpu.memory_space<vmem>>, vector<16x16xf32>
      %c0_12 = arith.constant 0 : index
      %c0_13 = arith.constant 0 : index
      %13 = vector.load %arg5[%c0_12, %c0_13] : memref<1x16xf32, #tpu.memory_space<vmem>>, vector<1x16xf32>
      %14 = vector.broadcast %13 : vector<1x16xf32> to vector<16x16xf32>
      %15 = arith.addf %12, %14 : vector<16x16xf32>
      %c0_14 = arith.constant 0 : index
      %c0_15 = arith.constant 0 : index
      %16 = vector.load %arg6[%c0_14, %c0_15] : memref<16x16xf32, #tpu.memory_space<vmem>>, vector<16x16xf32>
      tpu.vector_store %arg6[%c0_14, %c0_15], %15 {strides = array<i32>} : memref<16x16xf32, #tpu.memory_space<vmem>>, vector<16x16xf32>,
    } else {
    }
    return
  }
  func.func @transform_0(%arg0: i32, %arg1: i32, %arg2: i32) -> (i32, i32) {
    %c0_i32 = arith.constant 0 : i32
    return %arg0, %arg2 : i32, i32
  }
  func.func @transform_1(%arg0: i32, %arg1: i32, %arg2: i32) -> (i32, i32) {
    %c0_i32 = arith.constant 0 : i32
    return %arg2, %arg1 : i32, i32
  }
  func.func @transform_2(%arg0: i32, %arg1: i32, %arg2: i32) -> (i32, i32) {
    %c0_i32 = arith.constant 0 : i32
    %c0_i32_0 = arith.constant 0 : i32
    return %c0_i32, %arg1 : i32, i32
  }
  func.func @transform_3(%arg0: i32, %arg1: i32, %arg2: i32) -> (i32, i32) {
    %c0_i32 = arith.constant 0 : i32
    return %arg0, %arg1 : i32, i32
  }
}

module attributes {stable_mosaic.version = 11 : i64} {
  func.func @_matmul_bias_ln_kernel(%arg0: i32, %arg1: i32, %arg2: memref<16x64xbf16, #tpu.memory_space<vmem>>, %arg3: memref<64x32xbf16, #tpu.memory_space<vmem>>, %arg4: memref<1x32xf32, #tpu.memory_space<vmem>>, %arg5: memref<16x32xbf16, #tpu.memory_space<vmem>>, %arg6: memref<1x32xf32, #tpu.memory_space<vmem>>, %arg7: memref<1x32xf32, #tpu.memory_space<vmem>>, %arg8: memref<16x32xbf16, #tpu.memory_space<vmem>>, %arg9: memref<16x32xf32, #tpu.memory_space<vmem>>) attributes {dimension_semantics = [#tpu.dimension_semantics<parallel>, #tpu.dimension_semantics<arbitrary>], iteration_bounds = array<i64: 1, 1>, scalar_prefetch = 0 : i64, scratch_operands = 1 : i64, tpu.core_type = #tpu.core_type<tc>, window_params = [{transform_indices = @transform_0, window_bounds = array<i64: 16, 64>}, {transform_indices = @transform_1, window_bounds = array<i64: 64, 32>}, {pipeline_mode = #tpu.pipeline_mode<synchronous>, transform_indices = @transform_2, window_bounds = array<i64: 1, 32>}, {transform_indices = @transform_3, window_bounds = array<i64: 16, 32>}, {pipeline_mode = #tpu.pipeline_mode<synchronous>, transform_indices = @transform_4, window_bounds = array<i64: 1, 32>}, {pipeline_mode = #tpu.pipeline_mode<synchronous>, transform_indices = @transform_5, window_bounds = array<i64: 1, 32>}, {transform_indices = @transform_6, window_bounds = array<i64: 16, 32>}]} {
    %c0_i32 = arith.constant 0 : i32
    %0 = arith.cmpi eq, %arg1, %c0_i32 : i32
    %1 = arith.extui %0 : i1 to i32
    %c0_i32_0 = arith.constant 0 : i32
    %2 = arith.cmpi ne, %1, %c0_i32_0 : i32
    scf.if %2 {
      %cst_10 = arith.constant 0.000000e+00 : f32
      %12 = vector.broadcast %cst_10 : f32 to vector<16x32xf32>
      %c0_11 = arith.constant 0 : index
      %c0_12 = arith.constant 0 : index
      %13 = vector.load %arg9[%c0_11, %c0_12] : memref<16x32xf32, #tpu.memory_space<vmem>>, vector<16x32xf32>
      tpu.vector_store %arg9[%c0_11, %c0_12], %12 {strides = array<i32>} : memref<16x32xf32, #tpu.memory_space<vmem>>, vector<16x32xf32>,
    } else {
    }
    %c0 = arith.constant 0 : index
    %c0_1 = arith.constant 0 : index
    %3 = vector.load %arg9[%c0, %c0_1] : memref<16x32xf32, #tpu.memory_space<vmem>>, vector<16x32xf32>
    %c0_2 = arith.constant 0 : index
    %c0_3 = arith.constant 0 : index
    %4 = vector.load %arg2[%c0_2, %c0_3] : memref<16x64xbf16, #tpu.memory_space<vmem>>, vector<16x64xbf16>
    %c0_4 = arith.constant 0 : index
    %c0_5 = arith.constant 0 : index
    %5 = vector.load %arg3[%c0_4, %c0_5] : memref<64x32xbf16, #tpu.memory_space<vmem>>, vector<64x32xbf16>
    %cst = arith.constant dense<0.000000e+00> : vector<16x32xf32>
    %6 = tpu.matmul %4, %5, %cst {dimension_numbers = #tpu.dot_dimension_numbers<[1], [0], [0], [1], [0, 0, 1, 1], [], []>} : vector<16x64xbf16>, vector<64x32xbf16>, vector<16x32xf32> -> vector<16x32xf32>
    %7 = arith.addf %3, %6 : vector<16x32xf32>
    %c0_6 = arith.constant 0 : index
    %c0_7 = arith.constant 0 : index
    %8 = vector.load %arg9[%c0_6, %c0_7] : memref<16x32xf32, #tpu.memory_space<vmem>>, vector<16x32xf32>
    tpu.vector_store %arg9[%c0_6, %c0_7], %7 {strides = array<i32>} : memref<16x32xf32, #tpu.memory_space<vmem>>, vector<16x32xf32>,
    %c0_i32_8 = arith.constant 0 : i32
    %9 = arith.cmpi eq, %arg1, %c0_i32_8 : i32
    %10 = arith.extui %9 : i1 to i32
    %c0_i32_9 = arith.constant 0 : i32
    %11 = arith.cmpi ne, %10, %c0_i32_9 : i32
    scf.if %11 {
      %c0_10 = arith.constant 0 : index
      %c0_11 = arith.constant 0 : index
      %12 = vector.load %arg9[%c0_10, %c0_11] : memref<16x32xf32, #tpu.memory_space<vmem>>, vector<16x32xf32>
      %c0_12 = arith.constant 0 : index
      %c0_13 = arith.constant 0 : index
      %13 = vector.load %arg4[%c0_12, %c0_13] : memref<1x32xf32, #tpu.memory_space<vmem>>, vector<1x32xf32>
      %14 = vector.broadcast %13 : vector<1x32xf32> to vector<16x32xf32>
      %15 = arith.addf %12, %14 : vector<16x32xf32>
      %c0_14 = arith.constant 0 : index
      %c0_15 = arith.constant 0 : index
      %16 = vector.load %arg5[%c0_14, %c0_15] : memref<16x32xbf16, #tpu.memory_space<vmem>>, vector<16x32xbf16>
      %17 = arith.extf %16 : vector<16x32xbf16> to vector<16x32xf32>
      %18 = arith.addf %15, %17 : vector<16x32xf32>
      %cst_16 = arith.constant dense<0.000000e+00> : vector<16xf32>
      %19 = vector.multi_reduction <add>, %18, %cst_16 [1] : vector<16x32xf32> to vector<16xf32>
      %20 = vector.shape_cast %19 : vector<16xf32> to vector<16x1xf32>
      %cst_17 = arith.constant 3.200000e+01 : f32
      %21 = vector.broadcast %cst_17 : f32 to vector<16x1xf32>
      %22 = arith.divf %20, %21 : vector<16x1xf32>
      %23 = vector.broadcast %22 : vector<16x1xf32> to vector<16x32xf32>
      %24 = arith.subf %18, %23 : vector<16x32xf32>
      %25 = arith.mulf %24, %24 : vector<16x32xf32>
      %cst_18 = arith.constant dense<0.000000e+00> : vector<16xf32>
      %26 = vector.multi_reduction <add>, %25, %cst_18 [1] : vector<16x32xf32> to vector<16xf32>
      %27 = vector.shape_cast %26 : vector<16xf32> to vector<16x1xf32>
      %cst_19 = arith.constant 3.200000e+01 : f32
      %28 = vector.broadcast %cst_19 : f32 to vector<16x1xf32>
      %29 = arith.divf %27, %28 : vector<16x1xf32>
      %cst_20 = arith.constant 9.99999974E-6 : f32
      %30 = vector.broadcast %cst_20 : f32 to vector<16x1xf32>
      %31 = arith.addf %29, %30 : vector<16x1xf32>
      %32 = math.rsqrt %31 : vector<16x1xf32>
      %33 = vector.broadcast %22 : vector<16x1xf32> to vector<16x32xf32>
      %34 = arith.subf %18, %33 : vector<16x32xf32>
      %35 = vector.broadcast %32 : vector<16x1xf32> to vector<16x32xf32>
      %36 = arith.mulf %34, %35 : vector<16x32xf32>
      %c0_21 = arith.constant 0 : index
      %c0_22 = arith.constant 0 : index
      %37 = vector.load %arg6[%c0_21, %c0_22] : memref<1x32xf32, #tpu.memory_space<vmem>>, vector<1x32xf32>
      %38 = vector.broadcast %37 : vector<1x32xf32> to vector<16x32xf32>
      %39 = arith.mulf %36, %38 : vector<16x32xf32>
      %c0_23 = arith.constant 0 : index
      %c0_24 = arith.constant 0 : index
      %40 = vector.load %arg7[%c0_23, %c0_24] : memref<1x32xf32, #tpu.memory_space<vmem>>, vector<1x32xf32>
      %41 = vector.broadcast %40 : vector<1x32xf32> to vector<16x32xf32>
      %42 = arith.addf %39, %41 : vector<16x32xf32>
      %43 = arith.truncf %42 : vector<16x32xf32> to vector<16x32xbf16>
      %c0_25 = arith.constant 0 : index
      %c0_26 = arith.constant 0 : index
      %44 = vector.load %arg8[%c0_25, %c0_26] : memref<16x32xbf16, #tpu.memory_space<vmem>>, vector<16x32xbf16>
      tpu.vector_store %arg8[%c0_25, %c0_26], %43 {strides = array<i32>} : memref<16x32xbf16, #tpu.memory_space<vmem>>, vector<16x32xbf16>,
    } else {
    }
    return
  }
  func.func @transform_0(%arg0: i32, %arg1: i32) -> (i32, i32) {
    %c0_i32 = arith.constant 0 : i32
    return %arg0, %arg1 : i32, i32
  }
  func.func @transform_1(%arg0: i32, %arg1: i32) -> (i32, i32) {
    %c0_i32 = arith.constant 0 : i32
    %c0_i32_0 = arith.constant 0 : i32
    return %arg1, %c0_i32 : i32, i32
  }
  func.func @transform_2(%arg0: i32, %arg1: i32) -> (i32, i32) {
    %c0_i32 = arith.constant 0 : i32
    %c0_i32_0 = arith.constant 0 : i32
    %c0_i32_1 = arith.constant 0 : i32
    return %c0_i32, %c0_i32_0 : i32, i32
  }
  func.func @transform_3(%arg0: i32, %arg1: i32) -> (i32, i32) {
    %c0_i32 = arith.constant 0 : i32
    %c0_i32_0 = arith.constant 0 : i32
    return %arg0, %c0_i32 : i32, i32
  }
  func.func @transform_4(%arg0: i32, %arg1: i32) -> (i32, i32) {
    %c0_i32 = arith.constant 0 : i32
    %c0_i32_0 = arith.constant 0 : i32
    %c0_i32_1 = arith.constant 0 : i32
    return %c0_i32, %c0_i32_0 : i32, i32
  }
  func.func @transform_5(%arg0: i32, %arg1: i32) -> (i32, i32) {
    %c0_i32 = arith.constant 0 : i32
    %c0_i32_0 = arith.constant 0 : i32
    %c0_i32_1 = arith.constant 0 : i32
    return %c0_i32, %c0_i32_0 : i32, i32
  }
  func.func @transform_6(%arg0: i32, %arg1: i32) -> (i32, i32) {
    %c0_i32 = arith.constant 0 : i32
    %c0_i32_0 = arith.constant 0 : i32
    return %arg0, %c0_i32 : i32, i32
  }
}

</mosaic_0001>

<bundles_post_ra>
// kernel: graph_transformer_v2_forward.15
= control target key start
LH: loop header
LB: loop body
LE: loop exit
PB: predicated region body
PF: predicated region fallthrough
CT: control target
= control target key end

     0   :  { %vm28_vm0 = vcmask 261120   ;;  %v220_v0 = vmov 0.0   ;;  %vm221_vm1 = vmmov 0   ;;  %vm178_vm2 = vcmask 257024   ;;  %s293_s1 = inlined_call_operand.vmem [shape: bf16[32,32], index: 1, kind: input, shape index: {}]   ;;  %s294_s0 = inlined_call_operand.vmem [shape: bf16[16,32], index: 0, kind: input, shape index: {}]   ;;  %s295_s3 = inlined_call_operand.vmem [shape: bf16[16,32], index: 3, kind: input, shape index: {}]   ;;  %s296_s2 = inlined_call_operand.vmem [shape: f32[1,32], index: 2, kind: input, shape index: {}]   ;;  %s297_s4 = inlined_call_operand.vmem [shape: f32[1,32], index: 4, kind: input, shape index: {}]   ;;  %s298_s5 = inlined_call_operand.vmem [shape: f32[1,32], index: 5, kind: input, shape index: {}]   ;;  %s299_s6 = inlined_call_operand.vmem [shape: bf16[16,32], index: 6, kind: output, shape index: {}]  }
   0x1   :  { %203 = vmatprep.subr.bf16.mxu0 %v220_v0  ;;  %v213_v1 = vld [vmem:[%s293_s1 + $0x8] sm:$0xff]   ;;  %207 = vmatprep.mubr.msk.bf16.mxu0 %vm221_vm1, %v220_v0  ;;  %29 = vst.msk [vmem:[#allocation2] sm:$0xff] %vm28_vm0, %v220_v0  ;;  %30 = vst.msk [vmem:[#allocation2 + $0x8] sm:$0xff] %vm28_vm0, %v220_v0  ;;  %v214_v2 = vld [vmem:[%s293_s1] sm:$0xff]  }
   0x2   :  { %204 = vmatpush3.bf16.msra.mxu0 %v213_v1  ;;  %v215_v3 = vld [vmem:[%s294_s0] sm:$0xff]  }
   0x3   :  { %205 = vmatprep.subr.bf16.mxu0 %v220_v0  ;;  %v197_v12 = vld [vmem:[%s295_s3] sm:$0xff]  }
   0x4   :  { %v189_v13 = vld [vmem:[%s296_s2] ss:$0 sm:$0xff]  ;;  %v198_v14 = vunpack.c.l.bf16 %v197_v12  ;;  %v199_v18 = vunpack.c.h.bf16 %v197_v12 }
   0x5   :  { %v190_v41 = vld [vmem:[%s297_s4] ss:$0 sm:$0xff] }
   0x6   :  { %206 = vmatpush3.bf16.msra.mxu0 %v214_v2  ;;  %v191_v43 = vld [vmem:[%s298_s5] ss:$0 sm:$0xff] }
   0x8   :  { %v31_v4 = vld [vmem:[#allocation2] sm:$0xff]  ;;  %v32_v8 = vld [vmem:[#allocation2 + $0x8] sm:$0xff] }
   0x9   :  { %208 = vmatmul.mubr.msk.bf16.vlgmr.msra.gmra.mxu0 %vm28_vm0, %v215_v3 }
  0xc9   :  { %v94_v5 = vpop.f32.mrf.mxu0 }
  0xca   :  { %v101_v6 = vadd.f32 %v94_v5, %v31_v4 }
  0xcb   :  { %v209_v7 = vpop.f32.mrf.mxu0 }
  0xcc   :  { %103 = vst.msk [vmem:[#allocation2] sm:$0xff] %vm28_vm0, %v101_v6 }
  0xcd   :  { %v97_v9 = vpop.f32.mrf.mxu0 }
  0xce   :  { %v102_v10 = vadd.f32 %v97_v9, %v32_v8 }
  0xcf   :  { %v210_v11 = vpop.f32.mrf.mxu0 }
  0xd0   :  { %104 = vst.msk [vmem:[#allocation2 + $0x8] sm:$0xff] %vm28_vm0, %v102_v10 }
  0xd3   :  { %v108_v15 = vld [vmem:[#allocation2] sm:$0xff] }
  0xd4   :  { %v117_v16 = vadd.f32 %v189_v13, %v108_v15 }
  0xd6   :  { %v123_v17 = vadd.f32 %v198_v14, %v117_v16 }
  0xd7   :  { %v109_v19 = vld [vmem:[#allocation2 + $0x8] sm:$0xff] }
  0xd8   :  { %v125_v20 = vsel %vm28_vm0, %v123_v17, 0.0  ;;  %v118_v21 = vadd.f32 %v189_v13, %v109_v19 }
  0xd9   :  { %126 = vadd.xlane.f32.xlu0 %v125_v20 }
  0xda   :  { %v124_v22 = vadd.f32 %v199_v18, %v118_v21 }
  0xdc   :  { %v128_v23 = vsel %vm28_vm0, %v124_v22, 0.0 }
  0xdd   :  { %129 = vadd.xlane.f32.xlu0 %v128_v23 }
 0x162   :  { %v127_v24 = vpop.xlane.xlu0 %126 }
 0x163   :  { %v132_v25 = vmul.f32 0.03125, %v127_v24 }
 0x165   :  { %v134_v26 = vsub.f32 %v123_v17, %v132_v25 }
 0x166   :  { %v130_v27 = vpop.xlane.xlu0 %129 }
 0x167   :  { %v133_v28 = vmul.f32 0.03125, %v130_v27  ;;  %v136_v29 = vmul.f32 %v134_v26, %v134_v26 }
 0x169   :  { %v135_v30 = vsub.f32 %v124_v22, %v133_v28  ;;  %v138_v31 = vsel %vm28_vm0, %v136_v29, 0.0 }
 0x16a   :  { %139 = vadd.xlane.f32.xlu1 %v138_v31 }
 0x16b   :  { %v137_v32 = vmul.f32 %v135_v30, %v135_v30 }
 0x16d   :  { %v141_v33 = vsel %vm28_vm0, %v137_v32, 0.0 }
 0x16e   :  { %142 = vadd.xlane.f32.xlu1 %v141_v33 }
 0x1f3   :  { %v140_v34 = vpop.xlane.xlu1 %139 }
 0x1f4   :  { %v144_v35 = vmul.f32 0.03125, %v140_v34 }
 0x1f6   :  { %v146_v36 = vadd.f32 1e-05, %v144_v35 }
 0x1f7   :  { %v143_v37 = vpop.xlane.xlu1 %142 }
 0x1f8   :  { %216 = vrsqrt.f32 %v146_v36  ;;  %v145_v38 = vmul.f32 0.03125, %v143_v37 }
 0x1fa   :  { %v147_v39 = vadd.f32 1e-05, %v145_v38 }
 0x1fc   :  { %218 = vrsqrt.f32 %v147_v39 }
 0x205   :  { %v217_v40 = vpop.eup %216 }
 0x206   :  { %v150_v42 = vmul.f32 %v217_v40, %v134_v26 }
 0x208   :  { %v159_v44 = vmul.f32 %v190_v41, %v150_v42 }
 0x209   :  { %v219_v45 = vpop.eup %218 }
 0x20a   :  { %v168_v46 = vadd.f32 %v191_v43, %v159_v44  ;;  %v151_v47 = vmul.f32 %v219_v45, %v135_v30 }
 0x20c   :  { %v194_v48 = vpack.c.bf16 %v168_v46, %v168_v46  ;;  %v160_v49 = vmul.f32 %v190_v41, %v151_v47 }
 0x20e   :  { %179 = vst.msk [vmem:[%s299_s6] sm:$0xf] %vm178_vm2, %v194_v48  ;;  %v169_v50 = vadd.f32 %v191_v43, %v160_v49 }
 0x210   :  { %v195_v51 = vpack.c.bf16 %v169_v50, %v169_v50 }
 0x212   :  { %180 = vst.msk [vmem:[%s299_s6 + $0x4] sm:$0xf] %vm178_vm2, %v195_v51 }

// kernel: graph_transformer_v2_forward.13
= control target key start
LH: loop header
LB: loop body
LE: loop exit
PB: predicated region body
PF: predicated region fallthrough
CT: control target
= control target key end

     0   :  { %vm19_vm0 = vcmask 785408   ;;  %v151_v0 = vmov 0.0   ;;  %vm152_vm1 = vmmov 0   ;;  %vm47_vm2 = vcmask 261120   ;;  %s195_s1 = inlined_call_operand.vmem [shape: bf16[32,96], index: 1, kind: input, shape index: {}]   ;;  %s196_s0 = inlined_call_operand.vmem [shape: bf16[16,32], index: 0, kind: input, shape index: {}]   ;;  %s197_s2 = inlined_call_operand.vmem [shape: f32[1,96], index: 2, kind: input, shape index: {}]   ;;  %s198_s3 = inlined_call_operand.vmem [shape: bf16[16,96], index: 3, kind: output, shape index: {}]  }
   0x1   :  { %138 = vmatprep.subr.bf16.mxu0 %v151_v0  ;;  %v148_v1 = vld [vmem:[%s195_s1 + $0x8] sm:$0xff]   ;;  %142 = vmatprep.mubr.msk.bf16.mxu0 %vm152_vm1, %v151_v0  ;;  %20 = vst.msk [vmem:[#allocation2] sm:$0xff] %vm19_vm0, %v151_v0  ;;  %21 = vst.msk [vmem:[#allocation2 + $0x8] sm:$0xff] %vm19_vm0, %v151_v0  ;;  %v149_v2 = vld [vmem:[%s195_s1] sm:$0xff]   ;;  %vm119_vm3 = vcmask 781312  }
   0x2   :  { %139 = vmatpush3.bf16.msra.mxu0 %v148_v1  ;;  %v150_v3 = vld [vmem:[%s196_s0] sm:$0xff]  }
   0x3   :  { %140 = vmatprep.subr.bf16.mxu0 %v151_v0  ;;  %v130_v12 = vld [vmem:[%s197_s2] ss:$0 sm:$0xff] }
   0x6   :  { %141 = vmatpush3.bf16.msra.mxu0 %v149_v2 }
   0x8   :  { %v22_v4 = vld [vmem:[#allocation2] sm:$0xff]  ;;  %v23_v8 = vld [vmem:[#allocation2 + $0x8] sm:$0xff] }
   0x9   :  { %143 = vmatmul.mubr.msk.bf16.vlgmr.msra.gmra.mxu0 %vm47_vm2, %v150_v3 }
  0xc9   :  { %v85_v5 = vpop.f32.mrf.mxu0 }
  0xca   :  { %v92_v6 = vadd.f32 %v85_v5, %v22_v4 }
  0xcb   :  { %v144_v7 = vpop.f32.mrf.mxu0 }
  0xcc   :  { %95 = vst.msk [vmem:[#allocation2] sm:$0xff] %vm19_vm0, %v92_v6 }
  0xcd   :  { %v88_v9 = vpop.f32.mrf.mxu0 }
  0xce   :  { %v93_v10 = vadd.f32 %v88_v9, %v23_v8 }
  0xcf   :  { %v145_v11 = vpop.f32.mrf.mxu0 }
  0xd0   :  { %96 = vst.msk [vmem:[#allocation2 + $0x8] sm:$0xff] %vm19_vm0, %v93_v10 }
  0xd3   :  { %v100_v13 = vld [vmem:[#allocation2] sm:$0xff] }
  0xd4   :  { %v109_v14 = vadd.f32 %v130_v12, %v100_v13 }
  0xd6   :  { %v133_v15 = vpack.c.bf16 %v109_v14, %v109_v14 }
  0xd7   :  { %v101_v16 = vld [vmem:[#allocation2 + $0x8] sm:$0xff] }
  0xd8   :  { %120 = vst.msk [vmem:[%s198_s3] sm:$0xf] %vm119_vm3, %v133_v15  ;;  %v110_v17 = vadd.f32 %v130_v12, %v101_v16 }
  0xda   :  { %v134_v18 = vpack.c.bf16 %v110_v17, %v110_v17 }
  0xdc   :  { %121 = vst.msk [vmem:[%s198_s3 + $0x4] sm:$0xf] %vm119_vm3, %v134_v18 }

// kernel: graph_transformer_v2_forward.12
= control target key start
LH: loop header
LB: loop body
LE: loop exit
PB: predicated region body
PF: predicated region fallthrough
CT: control target
= control target key end

     0   :  { %vm25_vm0 = vcmask 261120   ;;  %v195_v0 = vmov 0.0   ;;  %vm196_vm1 = vmmov 0   ;;  %vm45_vm2 = vcmask 130048   ;;  %s256_s1 = inlined_call_operand.vmem [shape: bf16[16,32], index: 1, kind: input, shape index: {}]   ;;  %s257_s0 = inlined_call_operand.vmem [shape: bf16[16,16], index: 0, kind: input, shape index: {}]   ;;  %s258_s2 = inlined_call_operand.vmem [shape: f32[1,32], index: 2, kind: input, shape index: {}]   ;;  %s259_s3 = inlined_call_operand.vmem [shape: f32[1,32], index: 3, kind: input, shape index: {}]   ;;  %s260_s4 = inlined_call_operand.vmem [shape: f32[1,32], index: 4, kind: input, shape index: {}]   ;;  %s261_s5 = inlined_call_operand.vmem [shape: bf16[16,32], index: 5, kind: output, shape index: {}]  }
   0x1   :  { %26 = vst.msk [vmem:[#allocation2] sm:$0xff] %vm25_vm0, %v195_v0  ;;  %27 = vst.msk [vmem:[#allocation2 + $0x8] sm:$0xff] %vm25_vm0, %v195_v0  ;;  %181 = vmatprep.subr.bf16.mxu0 %v195_v0  ;;  %v189_v1 = vld [vmem:[%s256_s1] sm:$0xff]   ;;  %183 = vmatprep.mubr.msk.bf16.mxu0 %vm196_vm1, %v195_v0  ;;  %vm162_vm3 = vcmask 257024  }
   0x2   :  { %v190_v2 = vld [vmem:[%s257_s0] sm:$0xff]   ;;  %182 = vmatpush3.bf16.msra.mxu0 %v189_v1 }
   0x3   :  { %v172_v11 = vld [vmem:[%s258_s2] ss:$0 sm:$0xff] }
   0x4   :  { %v173_v35 = vld [vmem:[%s259_s3] ss:$0 sm:$0xff] }
   0x5   :  { %184 = vmatmul.mubr.msk.bf16.vlgmr.msra.gmra.mxu0 %vm45_vm2, %v190_v2  ;;  %v174_v37 = vld [vmem:[%s260_s4] ss:$0 sm:$0xff] }
   0x8   :  { %v28_v3 = vld [vmem:[#allocation2] sm:$0xff]  ;;  %v29_v7 = vld [vmem:[#allocation2 + $0x8] sm:$0xff] }
  0xc5   :  { %v83_v4 = vpop.f32.mrf.mxu0 }
  0xc6   :  { %v90_v5 = vadd.f32 %v83_v4, %v28_v3 }
  0xc7   :  { %v185_v6 = vpop.f32.mrf.mxu0 }
  0xc8   :  { %93 = vst.msk [vmem:[#allocation2] sm:$0xff] %vm25_vm0, %v90_v5 }
  0xc9   :  { %v86_v8 = vpop.f32.mrf.mxu0 }
  0xca   :  { %v91_v9 = vadd.f32 %v86_v8, %v29_v7 }
  0xcb   :  { %v186_v10 = vpop.f32.mrf.mxu0 }
  0xcc   :  { %94 = vst.msk [vmem:[#allocation2 + $0x8] sm:$0xff] %vm25_vm0, %v91_v9 }
  0xcf   :  { %v98_v12 = vld [vmem:[#allocation2] sm:$0xff] }
  0xd0   :  { %v107_v13 = vadd.f32 %v172_v11, %v98_v12 }
  0xd2   :  { %v109_v14 = vsel %vm25_vm0, %v107_v13, 0.0 }
  0xd3   :  { %110 = vadd.xlane.f32.xlu0 %v109_v14  ;;  %v99_v15 = vld [vmem:[#allocation2 + $0x8] sm:$0xff] }
  0xd4   :  { %v108_v16 = vadd.f32 %v172_v11, %v99_v15 }
  0xd6   :  { %v112_v17 = vsel %vm25_vm0, %v108_v16, 0.0 }
  0xd7   :  { %113 = vadd.xlane.f32.xlu0 %v112_v17 }
 0x15c   :  { %v111_v18 = vpop.xlane.xlu0 %110 }
 0x15d   :  { %v116_v19 = vmul.f32 0.03125, %v111_v18 }
 0x15f   :  { %v118_v20 = vsub.f32 %v107_v13, %v116_v19 }
 0x160   :  { %v114_v21 = vpop.xlane.xlu0 %113 }
 0x161   :  { %v117_v22 = vmul.f32 0.03125, %v114_v21  ;;  %v120_v23 = vmul.f32 %v118_v20, %v118_v20 }
 0x163   :  { %v119_v24 = vsub.f32 %v108_v16, %v117_v22  ;;  %v122_v25 = vsel %vm25_vm0, %v120_v23, 0.0 }
 0x164   :  { %123 = vadd.xlane.f32.xlu1 %v122_v25 }
 0x165   :  { %v121_v26 = vmul.f32 %v119_v24, %v119_v24 }
 0x167   :  { %v125_v27 = vsel %vm25_vm0, %v121_v26, 0.0 }
 0x168   :  { %126 = vadd.xlane.f32.xlu1 %v125_v27 }
 0x1ed   :  { %v124_v28 = vpop.xlane.xlu1 %123 }
 0x1ee   :  { %v128_v29 = vmul.f32 0.03125, %v124_v28 }
 0x1f0   :  { %v130_v30 = vadd.f32 1e-05, %v128_v29 }
 0x1f1   :  { %v127_v31 = vpop.xlane.xlu1 %126 }
 0x1f2   :  { %191 = vrsqrt.f32 %v130_v30  ;;  %v129_v32 = vmul.f32 0.03125, %v127_v31 }
 0x1f4   :  { %v131_v33 = vadd.f32 1e-05, %v129_v32 }
 0x1f6   :  { %193 = vrsqrt.f32 %v131_v33 }
 0x1ff   :  { %v192_v34 = vpop.eup %191 }
 0x200   :  { %v134_v36 = vmul.f32 %v192_v34, %v118_v20 }
 0x202   :  { %v143_v38 = vmul.f32 %v173_v35, %v134_v36 }
 0x203   :  { %v194_v39 = vpop.eup %193 }
 0x204   :  { %v152_v40 = vadd.f32 %v174_v37, %v143_v38  ;;  %v135_v41 = vmul.f32 %v194_v39, %v119_v24 }
 0x206   :  { %v177_v42 = vpack.c.bf16 %v152_v40, %v152_v40  ;;  %v144_v43 = vmul.f32 %v173_v35, %v135_v41 }
 0x208   :  { %163 = vst.msk [vmem:[%s261_s5] sm:$0xf] %vm162_vm3, %v177_v42  ;;  %v153_v44 = vadd.f32 %v174_v37, %v144_v43 }
 0x20a   :  { %v178_v45 = vpack.c.bf16 %v153_v44, %v153_v44 }
 0x20c   :  { %164 = vst.msk [vmem:[%s261_s5 + $0x4] sm:$0xf] %vm162_vm3, %v178_v45 }

// kernel: graph_transformer_v2_forward.14
= control target key start
LH: loop header
LB: loop body
LE: loop exit
PB: predicated region body
PF: predicated region fallthrough
CT: control target
= control target key end

     0   :  { %v1155_v1 = vmov 0.0   ;;  %vm1156_vm0 = vmmov 0   ;;  %s1157_s8 = smov 96   ;;  %vm15_vm1 = vcmask 64512   ;;  %s1158_s9 = smov 64   ;;  %vm80_vm2 = vcmask 1043456   ;;  %s1359_s0 = inlined_call_operand.vmem [shape: bf16[16,96], index: 0, kind: input, shape index: {}]   ;;  %s1360_s1 = inlined_call_operand.vmem [shape: bf16[16,32], index: 1, kind: output, shape index: {}]  }
   0x1   :  { %v9_v0 = vld [vmem:[%s1359_s0] sm:$0xf]  ;;  %994 = vmatprep.subr.bf16.mxu0 %v1155_v1  ;;  %996 = vmatprep.mubr.msk.bf16.mxu0 %vm1156_vm0, %v1155_v1  ;;  %s1159_s10 = smov 88   ;;  %s1160_s11 = smov 72   ;;  %v1209_v11 = vld [vmem:[%s1359_s0 + $0x4] sm:$0xf] }
   0x2   :  { %v1187_v2 = vcombine.low %v9_v0, %v9_v0  ;;  %1000 = vmatprep.subr.bf16.mxu1 %v1155_v1  ;;  %1002 = vmatprep.mubr.msk.bf16.mxu1 %vm1156_vm0, %v1155_v1  ;;  %v1213_v12 = vcombine.low %v1209_v11, %v1209_v11  ;;  %s1161_s14 = smov 112   ;;  %s1162_s15 = smov 104   ;;  %vm470_vm3 = vcmask 130048   ;;  %vm472_vm4 = vcmask 195584  }
   0x3   :  { %s1163_s0 = smov 120   ;;  %s1164_s16 = smov 80   ;;  %vm475_vm5 = vcmask 257024  }
   0x4   :  { %13 = vrot.lane.b32.xlu0 %v1187_v2, %s1157_s8  ;;  %75 = vrot.lane.b32.xlu1 %v1187_v2, %s1158_s9  ;;  %s1165_s17 = smov 56   ;;  %s1166_s18 = smov 48  }
   0x5   :  { %s1167_s19 = smov 40   ;;  %s1168_s20 = smov 8  }
   0x6   :  { %s1169_s21 = smov 16   ;;  %s1170_s22 = smov 24  }
   0x8   :  { %126 = vrot.lane.b32.xlu1 %v1187_v2, %s1159_s10 }
  0x76   :  { %v14_v3 = vpop.permute.xlu0 %13  ;;  %v76_v13 = vpop.permute.xlu1 %75 }
  0x77   :  { %v20_v4 = vsel %vm15_vm1, %v14_v3, 0  ;;  %v82_v14 = vsel %vm80_vm2, %v76_v13, 0 }
  0x78   :  { %995 = vmatpush3.bf16.xpose.msra.mxu0 %v20_v4  ;;  %1001 = vmatpush3.bf16.msra.mxu1 %v82_v14 }
  0x79   :  { %1012 = vmatprep.subr.bf16.mxu0 %v1155_v1  ;;  %1006 = vmatprep.subr.bf16.mxu1 %v1155_v1 }
  0x7a   :  { %v127_v20 = vpop.permute.xlu1 %126 }
  0x7b   :  { %v132_v26 = vsel %vm15_vm1, %v127_v20, 0 }
  0x7f   :  { %997 = vmatmul.mubr.msk.bf16.vlgmr.msra.gmra.mxu0 %vm15_vm1, %v9_v0 }
  0x80   :  { %1014 = vmatprep.mubr.msk.bf16.mxu0 %vm1156_vm0, %v1155_v1 }
 0x13f   :  { %v56_v5 = vpop.f32.mrf.mxu0 }
 0x140   :  { %v62_v6 = vmul.f32 0.35355338, %v56_v5 }
 0x141   :  { %v998_v7 = vpop.f32.mrf.mxu0 }
 0x142   :  { %v63_v8 = vsel %vm15_vm1, %v62_v6, -inf }
 0x143   :  { %64 = vmax.xlane.f32.xlu0 %v63_v8  ;;  %v59_v9 = vpop.f32.mrf.mxu0 }
 0x145   :  { %v999_v10 = vpop.f32.mrf.mxu0 }
 0x159   :  { %348 = vrot.lane.b32.xlu0 %v1187_v2, %s1160_s11 }
 0x15d   :  { %701 = vrot.lane.b32.xlu0 %v1213_v12, %s1161_s14 }
 0x161   :  { %812 = vrot.lane.b32.xlu0 %v1213_v12, %s1162_s15 }
 0x1cc   :  { %v65_v15 = vpop.xlane.xlu0 %64 }
 0x1cd   :  { %v66_v16 = vsub.f32 %v62_v6, %v65_v15 }
 0x1cf   :  { %v67_v17 = vmul.f32 1.442695, %v66_v16 }
 0x1d0   :  { %v349_v30 = vpop.permute.xlu0 %348 }
 0x1d1   :  { %1123 = vpow2.f32 %v67_v17  ;;  %v354_v32 = vsel %vm15_vm1, %v349_v30, 0 }
 0x1d4   :  { %v702_v41 = vpop.permute.xlu0 %701 }
 0x1d8   :  { %v813_v43 = vpop.permute.xlu0 %812 }
 0x1de   :  { %v1124_v18 = vpop.eup %1123 }
 0x1df   :  { %v69_v19 = vsel %vm15_vm1, %v1124_v18, 0.0 }
 0x1e0   :  { %70 = vadd.xlane.f32.xlu1 %v69_v19 }
 0x1f1   :  { %124 = vrot.lane.b32.xlu1 %v1187_v2, %s1163_s0 }
 0x1f5   :  { %237 = vrot.lane.b32.xlu1 %v1187_v2, %s1164_s16 }
 0x1f9   :  { %235 = vrot.lane.b32.xlu1 %v1187_v2, %s1161_s14 }
 0x1fd   :  { %346 = vrot.lane.b32.xlu1 %v1187_v2, %s1162_s15 }
 0x201   :  { %481 = vrot.lane.b32.xlu1 %v1213_v12, %s1157_s8 }
 0x205   :  { %592 = vrot.lane.b32.xlu1 %v1213_v12, %s1159_s10 }
 0x209   :  { %590 = vrot.lane.b32.xlu1 %v1213_v12, %s1163_s0 }
 0x20d   :  { %703 = vrot.lane.b32.xlu1 %v1213_v12, %s1164_s16 }
 0x211   :  { %814 = vrot.lane.b32.xlu1 %v1213_v12, %s1160_s11 }
 0x269   :  { %v71_v21 = vpop.xlane.xlu1 %70 }
 0x26a   :  { %1125 = vrcp.f32 %v71_v21 }
 0x26d   :  { %v125_v24 = vpop.permute.xlu1 %124 }
 0x271   :  { %v238_v27 = vpop.permute.xlu1 %237 }
 0x272   :  { %v243_v28 = vsel %vm15_vm1, %v238_v27, 0 }
 0x275   :  { %v236_v29 = vpop.permute.xlu1 %235 }
 0x277   :  { %v1126_v22 = vpop.eup %1125 }
 0x278   :  { %v73_v23 = vmul.f32 %v1126_v22, %v1124_v18 }
 0x279   :  { %v347_v31 = vpop.permute.xlu1 %346 }
 0x27a   :  { %v74_v25 = vpack.c.bf16 %v73_v23, %v73_v23 }
 0x27c   :  { %1003 = vmatmul.mubr.msk.bf16.vlgmr.msra.gmra.mxu1 %vm15_vm1, %v74_v25 }
 0x27d   :  { %1007 = vmatpush3.bf16.xpose.msra.mxu1 %v132_v26  ;;  %1008 = vmatprep.mubr.msk.bf16.mxu1 %vm1156_vm0, %v1155_v1  ;;  %v482_v33 = vpop.permute.xlu1 %481 }
 0x27e   :  { %1018 = vmatprep.subr.bf16.mxu1 %v1155_v1  ;;  %v487_v34 = vsel %vm15_vm1, %v482_v33, 0 }
 0x281   :  { %v593_v35 = vpop.permute.xlu1 %592 }
 0x282   :  { %v598_v37 = vsel %vm15_vm1, %v593_v35, 0 }
 0x284   :  { %1009 = vmatmul.mubr.msk.bf16.vlgmr.msra.gmra.mxu1 %vm15_vm1, %v125_v24 }
 0x285   :  { %1019 = vmatpush3.bf16.xpose.msra.mxu1 %v243_v28  ;;  %1020 = vmatprep.mubr.msk.bf16.mxu1 %vm1156_vm0, %v1155_v1  ;;  %v591_v36 = vpop.permute.xlu1 %590 }
 0x286   :  { %1030 = vmatprep.subr.bf16.mxu1 %v1155_v1 }
 0x289   :  { %v704_v38 = vpop.permute.xlu1 %703 }
 0x28a   :  { %v709_v39 = vsel %vm15_vm1, %v704_v38, 0 }
 0x28c   :  { %1021 = vmatmul.mubr.msk.bf16.vlgmr.msra.gmra.mxu1 %vm15_vm1, %v236_v29 }
 0x28d   :  { %1031 = vmatpush3.bf16.xpose.msra.mxu1 %v354_v32  ;;  %1032 = vmatprep.mubr.msk.bf16.mxu1 %vm1156_vm0, %v1155_v1  ;;  %v815_v40 = vpop.permute.xlu1 %814 }
 0x28e   :  { %1042 = vmatprep.subr.bf16.mxu1 %v1155_v1  ;;  %v820_v42 = vsel %vm15_vm1, %v815_v40, 0 }
 0x294   :  { %1033 = vmatmul.mubr.msk.bf16.vlgmr.msra.gmra.mxu1 %vm15_vm1, %v347_v31 }
 0x295   :  { %1043 = vmatpush3.bf16.xpose.msra.mxu1 %v487_v34  ;;  %1044 = vmatprep.mubr.msk.bf16.mxu1 %vm1156_vm0, %v1155_v1 }
 0x296   :  { %1054 = vmatprep.subr.bf16.mxu1 %v1155_v1 }
 0x29c   :  { %1045 = vmatmul.mubr.msk.bf16.vlgmr.msra.gmra.mxu1 %vm15_vm1, %v1209_v11 }
 0x29d   :  { %1055 = vmatpush3.bf16.xpose.msra.mxu1 %v598_v37  ;;  %1056 = vmatprep.mubr.msk.bf16.mxu1 %vm1156_vm0, %v1155_v1 }
 0x29e   :  { %1066 = vmatprep.subr.bf16.mxu1 %v1155_v1 }
 0x2a4   :  { %1057 = vmatmul.mubr.msk.bf16.vlgmr.msra.gmra.mxu1 %vm15_vm1, %v591_v36 }
 0x2a5   :  { %1067 = vmatpush3.bf16.xpose.msra.mxu1 %v709_v39  ;;  %1068 = vmatprep.mubr.msk.bf16.mxu1 %vm1156_vm0, %v1155_v1 }
 0x2a6   :  { %1078 = vmatprep.subr.bf16.mxu1 %v1155_v1 }
 0x2ac   :  { %1069 = vmatmul.mubr.msk.bf16.vlgmr.msra.gmra.mxu1 %vm15_vm1, %v702_v41 }
 0x2ad   :  { %1079 = vmatpush3.bf16.xpose.msra.mxu1 %v820_v42  ;;  %1080 = vmatprep.mubr.msk.bf16.mxu1 %vm1156_vm0, %v1155_v1 }
 0x2b4   :  { %1081 = vmatmul.mubr.msk.bf16.vlgmr.msra.gmra.mxu1 %vm15_vm1, %v813_v43 }
 0x33c   :  { %v1268_v44 = vpop.f32.mrf.mxu1 }
 0x33e   :  { %v1004_v45 = vpop.f32.mrf.mxu1 }
 0x340   :  { %v121_v46 = vpop.f32.mrf.mxu1 }
 0x342   :  { %v1005_v47 = vpop.f32.mrf.mxu1 }
 0x344   :  { %v168_v48 = vpop.f32.mrf.mxu1 }
 0x345   :  { %v174_v49 = vmul.f32 0.35355338, %v168_v48 }
 0x346   :  { %v1010_v50 = vpop.f32.mrf.mxu1 }
 0x347   :  { %v175_v51 = vsel %vm15_vm1, %v174_v49, -inf }
 0x348   :  { %176 = vmax.xlane.f32.xlu1 %v175_v51  ;;  %v171_v52 = vpop.f32.mrf.mxu1 }
 0x34a   :  { %v1011_v53 = vpop.f32.mrf.mxu1 }
 0x34c   :  { %v279_v54 = vpop.f32.mrf.mxu1 }
 0x34d   :  { %v285_v55 = vmul.f32 0.35355338, %v279_v54 }
 0x34e   :  { %v1022_v56 = vpop.f32.mrf.mxu1 }
 0x34f   :  { %v286_v57 = vsel %vm15_vm1, %v285_v55, -inf }
 0x350   :  { %287 = vmax.xlane.f32.xlu0 %v286_v57  ;;  %v282_v58 = vpop.f32.mrf.mxu1 }
 0x352   :  { %v1023_v59 = vpop.f32.mrf.mxu1 }
 0x354   :  { %v390_v60 = vpop.f32.mrf.mxu1 }
 0x355   :  { %v396_v61 = vmul.f32 0.35355338, %v390_v60 }
 0x356   :  { %v1034_v62 = vpop.f32.mrf.mxu1 }
 0x357   :  { %v397_v63 = vsel %vm15_vm1, %v396_v61, -inf }
 0x358   :  { %398 = vmax.xlane.f32.xlu0 %v397_v63  ;;  %v393_v0 = vpop.f32.mrf.mxu1 }
 0x35a   :  { %v1035_v3 = vpop.f32.mrf.mxu1 }
 0x35c   :  { %v523_v4 = vpop.f32.mrf.mxu1 }
 0x35d   :  { %v1273_v5 = vmul.f32 0.35355338, %v523_v4 }
 0x35e   :  { %v1046_v6 = vpop.f32.mrf.mxu1 }
 0x35f   :  { %v530_v7 = vsel %vm15_vm1, %v1273_v5, -inf }
 0x360   :  { %531 = vmax.xlane.f32.xlu1 %v530_v7  ;;  %v526_v8 = vpop.f32.mrf.mxu1 }
 0x362   :  { %v1047_v9 = vpop.f32.mrf.mxu1 }
 0x364   :  { %v634_v10 = vpop.f32.mrf.mxu1 }
 0x365   :  { %v640_v11 = vmul.f32 0.35355338, %v634_v10 }
 0x366   :  { %v1058_v13 = vpop.f32.mrf.mxu1 }
 0x367   :  { %v641_v14 = vsel %vm15_vm1, %v640_v11, -inf }
 0x368   :  { %642 = vmax.xlane.f32.xlu0 %v641_v14  ;;  %v637_v15 = vpop.f32.mrf.mxu1 }
 0x36a   :  { %v1059_v16 = vpop.f32.mrf.mxu1 }
 0x36c   :  { %v745_v17 = vpop.f32.mrf.mxu1 }
 0x36d   :  { %v751_v18 = vmul.f32 0.35355338, %v745_v17 }
 0x36e   :  { %v1070_v19 = vpop.f32.mrf.mxu1 }
 0x36f   :  { %v752_v20 = vsel %vm15_vm1, %v751_v18, -inf }
 0x370   :  { %753 = vmax.xlane.f32.xlu1 %v752_v20  ;;  %v748_v21 = vpop.f32.mrf.mxu1 }
 0x372   :  { %v1071_v22 = vpop.f32.mrf.mxu1 }
 0x374   :  { %v856_v23 = vpop.f32.mrf.mxu1 }
 0x375   :  { %v862_v24 = vmul.f32 0.35355338, %v856_v23 }
 0x376   :  { %v1082_v25 = vpop.f32.mrf.mxu1 }
 0x377   :  { %v863_v26 = vsel %vm15_vm1, %v862_v24, -inf }
 0x378   :  { %864 = vmax.xlane.f32.xlu0 %v863_v26  ;;  %v859_v27 = vpop.f32.mrf.mxu1 }
 0x37a   :  { %v1083_v28 = vpop.f32.mrf.mxu1 }
 0x381   :  { %187 = vrot.lane.b32.xlu1 %v1187_v2, %s1165_s17 }
 0x38e   :  { %298 = vrot.lane.b32.xlu0 %v1187_v2, %s1166_s18 }
 0x3d1   :  { %v177_v29 = vpop.xlane.xlu1 %176 }
 0x3d2   :  { %v178_v30 = vsub.f32 %v174_v49, %v177_v29 }
 0x3d4   :  { %v179_v31 = vmul.f32 1.442695, %v178_v30 }
 0x3d6   :  { %1127 = vpow2.f32 %v179_v31 }
 0x3d9   :  { %v288_v32 = vpop.xlane.xlu0 %287 }
 0x3da   :  { %v289_v33 = vsub.f32 %v285_v55, %v288_v32 }
 0x3dc   :  { %v290_v34 = vmul.f32 1.442695, %v289_v33 }
 0x3de   :  { %1129 = vpow2.f32 %v290_v34 }
 0x3e1   :  { %v399_v35 = vpop.xlane.xlu0 %398 }
 0x3e2   :  { %v400_v36 = vsub.f32 %v396_v61, %v399_v35 }
 0x3e3   :  { %v1128_v37 = vpop.eup %1127 }
 0x3e4   :  { %v401_v38 = vmul.f32 1.442695, %v400_v36  ;;  %v181_v39 = vsel %vm15_vm1, %v1128_v37, 0.0 }
 0x3e5   :  { %182 = vadd.xlane.f32.xlu1 %v181_v39 }
 0x3e6   :  { %1131 = vpow2.f32 %v401_v38 }
 0x3e9   :  { %v532_v45 = vpop.xlane.xlu1 %531 }
 0x3ea   :  { %v533_v49 = vsub.f32 %v1273_v5, %v532_v45 }
 0x3eb   :  { %v1130_v40 = vpop.eup %1129 }
 0x3ec   :  { %v292_v41 = vsel %vm15_vm1, %v1130_v40, 0.0  ;;  %v534_v51 = vmul.f32 1.442695, %v533_v49 }
 0x3ed   :  { %293 = vadd.xlane.f32.xlu0 %v292_v41 }
 0x3ee   :  { %1133 = vpow2.f32 %v534_v51 }
 0x3f1   :  { %v643_v50 = vpop.xlane.xlu0 %642 }
 0x3f2   :  { %v644_v52 = vsub.f32 %v640_v11, %v643_v50 }
 0x3f3   :  { %v1286_v42 = vpop.eup %1131 }
 0x3f4   :  { %v403_v43 = vsel %vm15_vm1, %v1286_v42, 0.0  ;;  %v645_v55 = vmul.f32 1.442695, %v644_v52 }
 0x3f5   :  { %404 = vadd.xlane.f32.xlu1 %v403_v43 }
 0x3f6   :  { %1135 = vpow2.f32 %v645_v55 }
 0x3f9   :  { %v754_v46 = vpop.xlane.xlu1 %753 }
 0x3fa   :  { %v755_v54 = vsub.f32 %v751_v18, %v754_v46 }
 0x3fb   :  { %v1134_v59 = vpop.eup %1133 }
 0x3fc   :  { %v756_v57 = vmul.f32 1.442695, %v755_v54 }
 0x3fd   :  { %v188_v47 = vpop.permute.xlu1 %187 }
 0x3fe   :  { %v193_v48 = vsel %vm80_vm2, %v188_v47, 0  ;;  %1137 = vpow2.f32 %v756_v57 }
 0x3ff   :  { %1013 = vmatpush3.bf16.msra.mxu0 %v193_v48 }
 0x400   :  { %1024 = vmatprep.subr.bf16.mxu0 %v1155_v1 }
 0x401   :  { %v865_v53 = vpop.xlane.xlu0 %864 }
 0x402   :  { %v866_v56 = vsub.f32 %v862_v24, %v865_v53 }
 0x403   :  { %409 = vrot.lane.b32.xlu0 %v1187_v2, %s1167_s19  ;;  %v536_v2 = vsel %vm15_vm1, %v1134_v59, 0.0  ;;  %v1298_v60 = vpop.eup %1135 }
 0x404   :  { %v867_v58 = vmul.f32 1.442695, %v866_v56  ;;  %v647_v62 = vsel %vm15_vm1, %v1298_v60, 0.0 }
 0x405   :  { %v299_v5 = vpop.permute.xlu0 %298 }
 0x406   :  { %542 = vrot.lane.b32.xlu1 %v1213_v12, %s1158_s9  ;;  %1139 = vpow2.f32 %v867_v58  ;;  %v304_v11 = vsel %vm80_vm2, %v299_v5, 0 }
 0x40b   :  { %v1300_v61 = vpop.eup %1137 }
 0x40c   :  { %v758_v0 = vsel %vm15_vm1, %v1300_v61, 0.0 }
 0x413   :  { %v1304_v63 = vpop.eup %1139 }
 0x414   :  { %v869_v3 = vsel %vm15_vm1, %v1304_v63, 0.0 }
 0x422   :  { %537 = vadd.xlane.f32.xlu0 %v536_v2 }
 0x426   :  { %648 = vadd.xlane.f32.xlu0 %v647_v62 }
 0x42a   :  { %759 = vadd.xlane.f32.xlu1 %v758_v0  ;;  %870 = vadd.xlane.f32.xlu0 %v869_v3 }
 0x43b   :  { %764 = vrot.lane.b32.xlu1 %v1213_v12, %s1166_s18 }
 0x43f   :  { %875 = vrot.lane.b32.xlu1 %v1213_v12, %s1167_s19 }
 0x440   :  { %653 = vrot.lane.b32.xlu0 %v1213_v12, %s1165_s17 }
 0x46e   :  { %v183_v4 = vpop.xlane.xlu1 %182 }
 0x46f   :  { %1141 = vrcp.f32 %v183_v4 }
 0x476   :  { %v294_v6 = vpop.xlane.xlu0 %293 }
 0x477   :  { %1143 = vrcp.f32 %v294_v6 }
 0x47a   :  { %v410_v14 = vpop.permute.xlu0 %409 }
 0x47b   :  { %v415_v16 = vsel %vm80_vm2, %v410_v14, 0 }
 0x47c   :  { %v1142_v7 = vpop.eup %1141 }
 0x47d   :  { %v185_v8 = vmul.f32 %v1142_v7, %v1128_v37 }
 0x47e   :  { %v405_v9 = vpop.xlane.xlu1 %404 }
 0x47f   :  { %1145 = vrcp.f32 %v405_v9  ;;  %v186_v10 = vpack.c.bf16 %v185_v8, %v185_v8 }
 0x481   :  { %1015 = vmatmul.mubr.msk.bf16.vlgmr.msra.gmra.mxu0 %vm15_vm1, %v186_v10 }
 0x482   :  { %1025 = vmatpush3.bf16.msra.mxu0 %v304_v11  ;;  %1026 = vmatprep.mubr.msk.bf16.mxu0 %vm1156_vm0, %v1155_v1  ;;  %v543_v19 = vpop.permute.xlu1 %542 }
 0x483   :  { %1036 = vmatprep.subr.bf16.mxu0 %v1155_v1  ;;  %v548_v21 = vsel %vm80_vm2, %v543_v19, 0 }
 0x484   :  { %v1144_v12 = vpop.eup %1143 }
 0x485   :  { %v296_v13 = vmul.f32 %v1144_v12, %v1130_v40 }
 0x487   :  { %v297_v15 = vpack.c.bf16 %v296_v13, %v296_v13 }
 0x489   :  { %1027 = vmatmul.mubr.msk.bf16.vlgmr.msra.gmra.mxu0 %vm15_vm1, %v297_v15 }
 0x48a   :  { %1037 = vmatpush3.bf16.msra.mxu0 %v415_v16  ;;  %1038 = vmatprep.mubr.msk.bf16.mxu0 %vm1156_vm0, %v1155_v1 }
 0x48b   :  { %1048 = vmatprep.subr.bf16.mxu0 %v1155_v1 }
 0x48c   :  { %v1146_v17 = vpop.eup %1145 }
 0x48d   :  { %v407_v18 = vmul.f32 %v1146_v17, %v1286_v42 }
 0x48f   :  { %v408_v20 = vpack.c.bf16 %v407_v18, %v407_v18 }
 0x491   :  { %1039 = vmatmul.mubr.msk.bf16.vlgmr.msra.gmra.mxu0 %vm15_vm1, %v408_v20 }
 0x492   :  { %1049 = vmatpush3.bf16.msra.mxu0 %v548_v21  ;;  %1050 = vmatprep.mubr.msk.bf16.mxu0 %vm1156_vm0, %v1155_v1 }
 0x493   :  { %1060 = vmatprep.subr.bf16.mxu0 %v1155_v1 }
 0x4ab   :  { %v538_v22 = vpop.xlane.xlu0 %537 }
 0x4ac   :  { %1147 = vrcp.f32 %v538_v22 }
 0x4af   :  { %v649_v23 = vpop.xlane.xlu0 %648 }
 0x4b0   :  { %1149 = vrcp.f32 %v649_v23 }
 0x4b3   :  { %v760_v24 = vpop.xlane.xlu1 %759  ;;  %v871_v25 = vpop.xlane.xlu0 %870 }
 0x4b4   :  { %1151 = vrcp.f32 %v760_v24 }
 0x4b5   :  { %1153 = vrcp.f32 %v871_v25 }
 0x4b7   :  { %v654_v27 = vpop.permute.xlu0 %653  ;;  %v765_v33 = vpop.permute.xlu1 %764 }
 0x4b8   :  { %v659_v29 = vsel %vm80_vm2, %v654_v27, 0  ;;  %v770_v34 = vsel %vm80_vm2, %v765_v33, 0 }
 0x4b9   :  { %v1148_v26 = vpop.eup %1147 }
 0x4ba   :  { %v540_v28 = vmul.f32 %v1148_v26, %v1134_v59 }
 0x4bb   :  { %v876_v38 = vpop.permute.xlu1 %875 }
 0x4bc   :  { %v541_v30 = vpack.c.bf16 %v540_v28, %v540_v28  ;;  %v881_v39 = vsel %vm80_vm2, %v876_v38, 0 }
 0x4bd   :  { %v1150_v31 = vpop.eup %1149 }
 0x4be   :  { %1051 = vmatmul.mubr.msk.bf16.vlgmr.msra.gmra.mxu0 %vm15_vm1, %v541_v30  ;;  %v651_v32 = vmul.f32 %v1150_v31, %v1298_v60 }
 0x4bf   :  { %1061 = vmatpush3.bf16.msra.mxu0 %v659_v29  ;;  %1062 = vmatprep.mubr.msk.bf16.mxu0 %vm1156_vm0, %v1155_v1 }
 0x4c0   :  { %1072 = vmatprep.subr.bf16.mxu0 %v1155_v1  ;;  %v652_v35 = vpack.c.bf16 %v651_v32, %v651_v32 }
 0x4c1   :  { %v1152_v36 = vpop.eup %1151 }
 0x4c2   :  { %v762_v37 = vmul.f32 %v1152_v36, %v1300_v61  ;;  %v1154_v41 = vpop.eup %1153 }
 0x4c3   :  { %v873_v42 = vmul.f32 %v1154_v41, %v1304_v63 }
 0x4c4   :  { %v763_v40 = vpack.c.bf16 %v762_v37, %v762_v37 }
 0x4c5   :  { %v874_v43 = vpack.c.bf16 %v873_v42, %v873_v42 }
 0x4c6   :  { %1063 = vmatmul.mubr.msk.bf16.vlgmr.msra.gmra.mxu0 %vm15_vm1, %v652_v35 }
 0x4c7   :  { %1073 = vmatpush3.bf16.msra.mxu0 %v770_v34  ;;  %1074 = vmatprep.mubr.msk.bf16.mxu0 %vm1156_vm0, %v1155_v1 }
 0x4c8   :  { %1084 = vmatprep.subr.bf16.mxu0 %v1155_v1 }
 0x4ce   :  { %1075 = vmatmul.mubr.msk.bf16.vlgmr.msra.gmra.mxu0 %vm15_vm1, %v763_v40 }
 0x4cf   :  { %1085 = vmatpush3.bf16.msra.mxu0 %v881_v39  ;;  %1086 = vmatprep.mubr.msk.bf16.mxu0 %vm1156_vm0, %v1155_v1 }
 0x4d6   :  { %1087 = vmatmul.mubr.msk.bf16.vlgmr.msra.gmra.mxu0 %vm15_vm1, %v874_v43 }
 0x541   :  { %v229_v45 = vpop.f32.mrf.mxu0 }
 0x543   :  { %v1016_v46 = vpop.f32.mrf.mxu0 }
 0x545   :  { %v232_v47 = vpop.f32.mrf.mxu0 }
 0x547   :  { %v1017_v48 = vpop.f32.mrf.mxu0 }
 0x549   :  { %v340_v49 = vpop.f32.mrf.mxu0 }
 0x54b   :  { %v1028_v50 = vpop.f32.mrf.mxu0 }
 0x54d   :  { %v343_v51 = vpop.f32.mrf.mxu0 }
 0x54f   :  { %v1029_v52 = vpop.f32.mrf.mxu0 }
 0x551   :  { %v451_v53 = vpop.f32.mrf.mxu0 }
 0x553   :  { %v1040_v54 = vpop.f32.mrf.mxu0 }
 0x555   :  { %v454_v55 = vpop.f32.mrf.mxu0 }
 0x557   :  { %v1041_v56 = vpop.f32.mrf.mxu0 }
 0x57e   :  { %v584_v57 = vpop.f32.mrf.mxu0 }
 0x580   :  { %v1052_v58 = vpop.f32.mrf.mxu0 }
 0x582   :  { %v587_v1 = vpop.f32.mrf.mxu0 }
 0x584   :  { %v1053_v59 = vpop.f32.mrf.mxu0 }
 0x586   :  { %v695_v2 = vpop.f32.mrf.mxu0 }
 0x587   :  { %v1106_v60 = vpack.i.bf16 %v695_v2, %v229_v45 }
 0x588   :  { %v1064_v61 = vpop.f32.mrf.mxu0 }
 0x589   :  { %1107 = vrot.lane.b32.xlu1 %v1106_v60, %s1168_s20 }
 0x58a   :  { %v698_v62 = vpop.f32.mrf.mxu0 }
 0x58c   :  { %v1065_v63 = vpop.f32.mrf.mxu0 }
 0x58e   :  { %v806_v0 = vpop.f32.mrf.mxu0 }
 0x58f   :  { %v1111_v3 = vpack.i.bf16 %v806_v0, %v340_v49 }
 0x590   :  { %v1076_v4 = vpop.f32.mrf.mxu0 }
 0x591   :  { %1112 = vrot.lane.b32.xlu1 %v1111_v3, %s1169_s21 }
 0x592   :  { %v809_v5 = vpop.f32.mrf.mxu0 }
 0x594   :  { %v1077_v6 = vpop.f32.mrf.mxu0 }
 0x596   :  { %v917_v7 = vpop.f32.mrf.mxu0 }
 0x597   :  { %v1116_v8 = vpack.i.bf16 %v917_v7, %v451_v53 }
 0x598   :  { %v1088_v9 = vpop.f32.mrf.mxu0 }
 0x599   :  { %1117 = vrot.lane.b32.xlu0 %v1116_v8, %s1170_s22 }
 0x59a   :  { %v920_v10 = vpop.f32.mrf.mxu0 }
 0x59c   :  { %v1089_v11 = vpop.f32.mrf.mxu0 }
 0x5fb   :  { %v1108_v12 = vpop.permute.xlu1 %1107 }
 0x5fc   :  { %v1110_v14 = vunpack.i.h.bf16 %v1108_v12  ;;  %v1109_v15 = vunpack.i.l.bf16 %v1108_v12 }
 0x5fe   :  { %v935_v19 = vsel %vm15_vm1, %v584_v57, %v1110_v14  ;;  %v469_v20 = vsel %vm15_vm1, %v1268_v44, %v1109_v15 }
 0x603   :  { %v1113_v13 = vpop.permute.xlu1 %1112 }
 0x604   :  { %v1115_v16 = vunpack.i.h.bf16 %v1113_v13  ;;  %v1114_v17 = vunpack.i.l.bf16 %v1113_v13 }
 0x606   :  { %v936_v23 = vsel %vm470_vm3, %v935_v19, %v1115_v16  ;;  %v471_v24 = vsel %vm470_vm3, %v469_v20, %v1114_v17 }
 0x60b   :  { %v1118_v18 = vpop.permute.xlu0 %1117 }
 0x60c   :  { %v1120_v21 = vunpack.i.h.bf16 %v1118_v18  ;;  %v1119_v22 = vunpack.i.l.bf16 %v1118_v18 }
 0x60e   :  { %v937_v25 = vsel %vm472_vm4, %v936_v23, %v1120_v21  ;;  %v473_v26 = vsel %vm472_vm4, %v471_v24, %v1119_v22 }
 0x60f   :  { %v938_v27 = vpack.c.bf16 %v937_v25, %v937_v25  ;;  %v474_v28 = vpack.c.bf16 %v473_v26, %v473_v26 }
 0x611   :  { %939 = vst.msk [vmem:[%s1360_s1 + $0x4] sm:$0xf] %vm475_vm5, %v938_v27  ;;  %476 = vst.msk [vmem:[%s1360_s1] sm:$0xf] %vm475_vm5, %v474_v28 }

// kernel: graph_transformer_v2_forward.16
= control target key start
LH: loop header
LB: loop body
LE: loop exit
PB: predicated region body
PF: predicated region fallthrough
CT: control target
= control target key end

     0   :  { %vm19_vm0 = vcmask 523264   ;;  %v153_v0 = vmov 0.0   ;;  %vm154_vm1 = vmmov 0   ;;  %vm47_vm2 = vcmask 261120   ;;  %s197_s1 = inlined_call_operand.vmem [shape: bf16[32,64], index: 1, kind: input, shape index: {}]   ;;  %s198_s0 = inlined_call_operand.vmem [shape: bf16[16,32], index: 0, kind: input, shape index: {}]   ;;  %s199_s2 = inlined_call_operand.vmem [shape: f32[1,64], index: 2, kind: input, shape index: {}]   ;;  %s200_s3 = inlined_call_operand.vmem [shape: bf16[16,64], index: 3, kind: output, shape index: {}]  }
   0x1   :  { %140 = vmatprep.subr.bf16.mxu0 %v153_v0  ;;  %v150_v1 = vld [vmem:[%s197_s1 + $0x8] sm:$0xff]   ;;  %144 = vmatprep.mubr.msk.bf16.mxu0 %vm154_vm1, %v153_v0  ;;  %20 = vst.msk [vmem:[#allocation2] sm:$0xff] %vm19_vm0, %v153_v0  ;;  %21 = vst.msk [vmem:[#allocation2 + $0x8] sm:$0xff] %vm19_vm0, %v153_v0  ;;  %v151_v2 = vld [vmem:[%s197_s1] sm:$0xff]   ;;  %vm121_vm3 = vcmask 519168  }
   0x2   :  { %141 = vmatpush3.bf16.msra.mxu0 %v150_v1  ;;  %v152_v3 = vld [vmem:[%s198_s0] sm:$0xff]  }
   0x3   :  { %142 = vmatprep.subr.bf16.mxu0 %v153_v0  ;;  %v132_v12 = vld [vmem:[%s199_s2] ss:$0 sm:$0xff] }
   0x6   :  { %143 = vmatpush3.bf16.msra.mxu0 %v151_v2 }
   0x8   :  { %v22_v4 = vld [vmem:[#allocation2] sm:$0xff]  ;;  %v23_v8 = vld [vmem:[#allocation2 + $0x8] sm:$0xff] }
   0x9   :  { %145 = vmatmul.mubr.msk.bf16.vlgmr.msra.gmra.mxu0 %vm47_vm2, %v152_v3 }
  0xc9   :  { %v85_v5 = vpop.f32.mrf.mxu0 }
  0xca   :  { %v92_v6 = vadd.f32 %v85_v5, %v22_v4 }
  0xcb   :  { %v146_v7 = vpop.f32.mrf.mxu0 }
  0xcc   :  { %95 = vst.msk [vmem:[#allocation2] sm:$0xff] %vm19_vm0, %v92_v6 }
  0xcd   :  { %v88_v9 = vpop.f32.mrf.mxu0 }
  0xce   :  { %v93_v10 = vadd.f32 %v88_v9, %v23_v8 }
  0xcf   :  { %v147_v11 = vpop.f32.mrf.mxu0 }
  0xd0   :  { %96 = vst.msk [vmem:[#allocation2 + $0x8] sm:$0xff] %vm19_vm0, %v93_v10 }
  0xd3   :  { %v100_v13 = vld [vmem:[#allocation2] sm:$0xff] }
  0xd4   :  { %v109_v14 = vadd.f32 %v132_v12, %v100_v13 }
  0xd6   :  { %v111_v15 = vmax.f32 %v109_v14, 0.0 }
  0xd7   :  { %v101_v16 = vld [vmem:[#allocation2 + $0x8] sm:$0xff] }
  0xd8   :  { %v135_v17 = vpack.c.bf16 %v111_v15, %v111_v15  ;;  %v110_v18 = vadd.f32 %v132_v12, %v101_v16 }
  0xda   :  { %122 = vst.msk [vmem:[%s200_s3] sm:$0xf] %vm121_vm3, %v135_v17  ;;  %v112_v19 = vmax.f32 %v110_v18, 0.0 }
  0xdc   :  { %v136_v20 = vpack.c.bf16 %v112_v19, %v112_v19 }
  0xde   :  { %123 = vst.msk [vmem:[%s200_s3 + $0x4] sm:$0xf] %vm121_vm3, %v136_v20 }

// kernel: graph_transformer_v2_forward.23
= control target key start
LH: loop header
LB: loop body
LE: loop exit
PB: predicated region body
PF: predicated region fallthrough
CT: control target
= control target key end

     0   :  { %v176_v1 = vmov 0.0   ;;  %vm177_vm0 = vmmov 0   ;;  %vm20_vm1 = vcmask 130048   ;;  %s222_s0 = inlined_call_operand.vmem [shape: bf16[16,32], index: 0, kind: input, shape index: {}]   ;;  %s223_s1 = inlined_call_operand.vmem [shape: bf16[32,16], index: 1, kind: input, shape index: {}]   ;;  %s224_s2 = inlined_call_operand.vmem [shape: f32[1,16], index: 2, kind: input, shape index: {}]   ;;  %s225_s3 = inlined_call_operand.hbm [shape: f32[16,16], index: 3, kind: output, shape index: {}]  }
   0x1   :  { %v151_v0 = vld [vmem:[%s223_s1 + $0x8] sm:$0xff]   ;;  %138 = vmatprep.subr.bf16.mxu0 %v176_v1  ;;  %v152_v2 = vld [vmem:[%s223_s1] sm:$0xff]   ;;  %142 = vmatprep.mubr.msk.bf16.mxu0 %vm177_vm0, %v176_v1 }
   0x2   :  { %139 = vmatpush3.bf16.msra.mxu0 %v151_v0 }
   0x3   :  { %140 = vmatprep.subr.bf16.mxu0 %v176_v1 }
   0x4   :  { %8 = vsyncpa [#allocation4], 0  ;;  %21 = vst.msk [vmem:[#allocation2] sm:$0xff] %vm20_vm1, %v176_v1  ;;  %v153_v3 = vld [vmem:[%s222_s0] sm:$0xff]   ;;  %vm48_vm2 = vcmask 261120   ;;  %s178_s0 = smov [#allocation3]  }
   0x5   :  { %22 = vst.msk [vmem:[#allocation2 + $0x8] sm:$0xff] %vm20_vm1, %v176_v1  ;;  %v134_v12 = vld [vmem:[%s224_s2] ss:$0 sm:$0xff]  ;;  %s119_s19 = sshll.u32 %s178_s0, 4  ;;  %s120_s19 = int_to_ptr.vmem [resolvable:$true] %s119_s19 }
   0x6   :  { %141 = vmatpush3.bf16.msra.mxu0 %v152_v2  ;;  %s154_s20 = scalar_lea.vmem %s120_s19, 256  ;;  %p159_p1 = scmp.lt.s32.totalorder %s120_s19, %s120_s19 }
   0x7   :  { %p155_p0 = scmp.ne.s32.totalorder %s120_s19, %s154_s20  ;;  %p160_p2 = scmp.lt.s32.totalorder %s154_s20, %s154_s20 }
   0x9   :  { %143 = vmatmul.mubr.msk.bf16.vlgmr.msra.gmra.mxu0 %vm48_vm2, %v153_v3  ;;  %p161_p3 = por %p160_p2, %p159_p1 }
   0xb   :  { %v23_v4 = vld [vmem:[#allocation2] sm:$0xff]  ;;  %p162_p4 = pnand %p161_p3, %p155_p0 }
   0xc   :  { %v24_v8 = vld [vmem:[#allocation2 + $0x8] sm:$0xff] }
  0xc9   :  { %v86_v5 = vpop.f32.mrf.mxu0 }
  0xca   :  { %v93_v6 = vadd.f32 %v86_v5, %v23_v4 }
  0xcb   :  { %v144_v7 = vpop.f32.mrf.mxu0 }
  0xcc   :  { %96 = vst.msk [vmem:[#allocation2] sm:$0xff] %vm20_vm1, %v93_v6 }
  0xcd   :  { %v89_v9 = vpop.f32.mrf.mxu0 }
  0xce   :  { %v94_v10 = vadd.f32 %v89_v9, %v24_v8 }
  0xcf   :  { %v145_v11 = vpop.f32.mrf.mxu0 }
  0xd0   :  { %97 = vst.msk [vmem:[#allocation2 + $0x8] sm:$0xff] %vm20_vm1, %v94_v10 }
  0xd3   :  { %v101_v13 = vld [vmem:[#allocation2] sm:$0xff] }
  0xd4   :  { %v110_v14 = vadd.f32 %v134_v12, %v101_v13 }
  0xd6   :  { %112 = vst.msk [vmem:[#allocation3] sm:$0xff] %vm20_vm1, %v110_v14 }
  0xd7   :  { %v102_v15 = vld [vmem:[#allocation2 + $0x8] sm:$0xff] }
  0xd8   :  { %v111_v16 = vadd.f32 %v134_v12, %v102_v15 }
  0xda   :  { %113 = vst.msk [vmem:[#allocation3 + $0x8] sm:$0xff] %vm20_vm1, %v111_v16 }
  0xdb   :  { %165 = shalt.err (!%p162_p4)
}
  0xdc   :  { %s179_s21 = smov 128   ;;  %s180_s2 = smov 8  }
  0xdd   :  { %125 = dma.vmem_to_hbm [thread:$0]  %s120_s19, 256, %s225_s3, [#allocation4], %s179_s21, %s179_s21, %s180_s2  }
  0xde   :  { %174 = dma.done.wait [#allocation4], 256  }
  0xdf   :  { %175 = vsyncadd [#allocation4], 4294967040 }
  0xe0   :  { %129 = vsyncpa [#allocation4], 1 }

// kernel: graph_transformer_v2_forward.17
= control target key start
LH: loop header
LB: loop body
LE: loop exit
PB: predicated region body
PF: predicated region fallthrough
CT: control target
= control target key end

     0   :  { %vm28_vm0 = vcmask 261120   ;;  %v247_v0 = vmov 0.0   ;;  %vm248_vm1 = vmmov 0   ;;  %vm72_vm2 = vcmask 523264   ;;  %s325_s1 = inlined_call_operand.vmem [shape: bf16[64,32], index: 1, kind: input, shape index: {}]   ;;  %s326_s0 = inlined_call_operand.vmem [shape: bf16[16,64], index: 0, kind: input, shape index: {}]   ;;  %s327_s3 = inlined_call_operand.vmem [shape: bf16[16,32], index: 3, kind: input, shape index: {}]   ;;  %s328_s2 = inlined_call_operand.vmem [shape: f32[1,32], index: 2, kind: input, shape index: {}]   ;;  %s329_s4 = inlined_call_operand.vmem [shape: f32[1,32], index: 4, kind: input, shape index: {}]   ;;  %s330_s5 = inlined_call_operand.vmem [shape: f32[1,32], index: 5, kind: input, shape index: {}]   ;;  %s331_s6 = inlined_call_operand.vmem [shape: bf16[16,32], index: 6, kind: output, shape index: {}]  }
   0x1   :  { %224 = vmatprep.subr.bf16.mxu0 %v247_v0  ;;  %v238_v1 = vld [vmem:[%s325_s1 + $0x18] sm:$0xff]   ;;  %232 = vmatprep.mubr.msk.bf16.mxu0 %vm248_vm1, %v247_v0  ;;  %29 = vst.msk [vmem:[#allocation2] sm:$0xff] %vm28_vm0, %v247_v0  ;;  %30 = vst.msk [vmem:[#allocation2 + $0x8] sm:$0xff] %vm28_vm0, %v247_v0  ;;  %v239_v2 = vld [vmem:[%s325_s1 + $0x10] sm:$0xff]   ;;  %vm195_vm3 = vcmask 257024  }
   0x2   :  { %225 = vmatpush3.bf16.msra.mxu0 %v238_v1  ;;  %v240_v3 = vld [vmem:[%s325_s1 + $0x8] sm:$0xff]   ;;  %v241_v4 = vld [vmem:[%s325_s1] sm:$0xff]  }
   0x3   :  { %226 = vmatprep.subr.bf16.mxu0 %v247_v0  ;;  %v242_v5 = vld [vmem:[%s326_s0] sm:$0xff]  }
   0x4   :  { %v216_v14 = vld [vmem:[%s327_s3] sm:$0xff]  }
   0x5   :  { %v208_v15 = vld [vmem:[%s328_s2] ss:$0 sm:$0xff]  ;;  %v217_v16 = vunpack.c.l.bf16 %v216_v14  ;;  %v218_v20 = vunpack.c.h.bf16 %v216_v14 }
   0x6   :  { %227 = vmatpush3.bf16.msra.mxu0 %v239_v2  ;;  %v209_v43 = vld [vmem:[%s329_s4] ss:$0 sm:$0xff] }
   0x7   :  { %228 = vmatprep.subr.bf16.mxu0 %v247_v0  ;;  %v210_v45 = vld [vmem:[%s330_s5] ss:$0 sm:$0xff] }
   0x8   :  { %v31_v6 = vld [vmem:[#allocation2] sm:$0xff]  ;;  %v32_v10 = vld [vmem:[#allocation2 + $0x8] sm:$0xff] }
   0xa   :  { %229 = vmatpush3.bf16.msra.mxu0 %v240_v3 }
   0xb   :  { %230 = vmatprep.subr.bf16.mxu0 %v247_v0 }
   0xe   :  { %231 = vmatpush3.bf16.msra.mxu0 %v241_v4 }
  0x11   :  { %233 = vmatmul.mubr.msk.bf16.vlgmr.msra.gmra.mxu0 %vm72_vm2, %v242_v5 }
  0xd1   :  { %v110_v7 = vpop.f32.mrf.mxu0 }
  0xd2   :  { %v117_v8 = vadd.f32 %v110_v7, %v31_v6 }
  0xd3   :  { %v234_v9 = vpop.f32.mrf.mxu0 }
  0xd4   :  { %120 = vst.msk [vmem:[#allocation2] sm:$0xff] %vm28_vm0, %v117_v8 }
  0xd5   :  { %v113_v11 = vpop.f32.mrf.mxu0 }
  0xd6   :  { %v118_v12 = vadd.f32 %v113_v11, %v32_v10 }
  0xd7   :  { %v235_v13 = vpop.f32.mrf.mxu0 }
  0xd8   :  { %121 = vst.msk [vmem:[#allocation2 + $0x8] sm:$0xff] %vm28_vm0, %v118_v12 }
  0xdb   :  { %v125_v17 = vld [vmem:[#allocation2] sm:$0xff] }
  0xdc   :  { %v134_v18 = vadd.f32 %v208_v15, %v125_v17 }
  0xde   :  { %v140_v19 = vadd.f32 %v217_v16, %v134_v18 }
  0xdf   :  { %v126_v21 = vld [vmem:[#allocation2 + $0x8] sm:$0xff] }
  0xe0   :  { %v142_v22 = vsel %vm28_vm0, %v140_v19, 0.0  ;;  %v135_v23 = vadd.f32 %v208_v15, %v126_v21 }
  0xe1   :  { %143 = vadd.xlane.f32.xlu0 %v142_v22 }
  0xe2   :  { %v141_v24 = vadd.f32 %v218_v20, %v135_v23 }
  0xe4   :  { %v145_v25 = vsel %vm28_vm0, %v141_v24, 0.0 }
  0xe5   :  { %146 = vadd.xlane.f32.xlu0 %v145_v25 }
 0x16a   :  { %v144_v26 = vpop.xlane.xlu0 %143 }
 0x16b   :  { %v149_v27 = vmul.f32 0.03125, %v144_v26 }
 0x16d   :  { %v151_v28 = vsub.f32 %v140_v19, %v149_v27 }
 0x16e   :  { %v147_v29 = vpop.xlane.xlu0 %146 }
 0x16f   :  { %v150_v30 = vmul.f32 0.03125, %v147_v29  ;;  %v153_v31 = vmul.f32 %v151_v28, %v151_v28 }
 0x171   :  { %v152_v32 = vsub.f32 %v141_v24, %v150_v30  ;;  %v155_v33 = vsel %vm28_vm0, %v153_v31, 0.0 }
 0x172   :  { %156 = vadd.xlane.f32.xlu1 %v155_v33 }
 0x173   :  { %v154_v34 = vmul.f32 %v152_v32, %v152_v32 }
 0x175   :  { %v158_v35 = vsel %vm28_vm0, %v154_v34, 0.0 }
 0x176   :  { %159 = vadd.xlane.f32.xlu1 %v158_v35 }
 0x1fb   :  { %v157_v36 = vpop.xlane.xlu1 %156 }
 0x1fc   :  { %v161_v37 = vmul.f32 0.03125, %v157_v36 }
 0x1fe   :  { %v163_v38 = vadd.f32 1e-05, %v161_v37 }
 0x1ff   :  { %v160_v39 = vpop.xlane.xlu1 %159 }
 0x200   :  { %243 = vrsqrt.f32 %v163_v38  ;;  %v162_v40 = vmul.f32 0.03125, %v160_v39 }
 0x202   :  { %v164_v41 = vadd.f32 1e-05, %v162_v40 }
 0x204   :  { %245 = vrsqrt.f32 %v164_v41 }
 0x20d   :  { %v244_v42 = vpop.eup %243 }
 0x20e   :  { %v167_v44 = vmul.f32 %v244_v42, %v151_v28 }
 0x210   :  { %v176_v46 = vmul.f32 %v209_v43, %v167_v44 }
 0x211   :  { %v246_v47 = vpop.eup %245 }
 0x212   :  { %v185_v48 = vadd.f32 %v210_v45, %v176_v46  ;;  %v168_v49 = vmul.f32 %v246_v47, %v152_v32 }
 0x214   :  { %v213_v50 = vpack.c.bf16 %v185_v48, %v185_v48  ;;  %v177_v51 = vmul.f32 %v209_v43, %v168_v49 }
 0x216   :  { %196 = vst.msk [vmem:[%s331_s6] sm:$0xf] %vm195_vm3, %v213_v50  ;;  %v186_v52 = vadd.f32 %v210_v45, %v177_v51 }
 0x218   :  { %v214_v53 = vpack.c.bf16 %v186_v52, %v186_v52 }
 0x21a   :  { %197 = vst.msk [vmem:[%s331_s6 + $0x4] sm:$0xf] %vm195_vm3, %v214_v53 }

</bundles_post_ra>
